<compile_context>
chip_gen: v6e
topology: v6e:2x2x1
jax: 0.10.0
libtpu: 0.0.40
codegen_flags: <defaults>
</compile_context>

<pallas_src>
import jax
import jax.numpy as jnp
from jax.experimental import pallas as pl
from jax.experimental.pallas import tpu as pltpu


# -----------------------------------------------------------------------------
# Kernel
# -----------------------------------------------------------------------------
def _lstm_kernel(x_ref,        # (T, Bp, 1)        time-major input
                 wbig_ref,     # (4*Hp, 4*Hp)      rows: [whh0 | wih1 ; whh1 | fcw]
                 small_ref,    # (4, 1, 4*Hp)      rows: wih0, b0, b1, fcb
                 out_ref,      # (Bp, 128)         column 0 is the result
                 xproj_ref):   # scratch (T, Bp, 4*Hp)
    T = x_ref.shape[0]
    Bp = out_ref.shape[0]
    Hp = small_ref.shape[-1] // 4          # per-gate lane slot (64)

    # --- hoisted small operands (loaded / broadcast once, not per step) ----
    wih0 = small_ref[0]                                    # (1, 4Hp)
    b0 = small_ref[1]                                      # (1, 4Hp)
    b1 = jnp.broadcast_to(small_ref[2], (Bp, 4 * Hp))      # (Bp, 4Hp)
    fcb = small_ref[3][:, 0:128]                           # (1, 128)

    # --- layer-0 input projection for ALL timesteps, off the serial path ---
    # input_size == 1  ->  broadcast multiply, no matmul needed.
    xproj_ref[...] = x_ref[...] * wih0 + b0                # (T, Bp, 4Hp)

    def gates_to_hc(gates, c):
        # PyTorch gate order i, f, g, o; each gate sits in its own Hp-lane slot.
        i = jax.nn.sigmoid(gates[:, 0 * Hp:1 * Hp])
        f = jax.nn.sigmoid(gates[:, 1 * Hp:2 * Hp])
        g = jnp.tanh(gates[:, 2 * Hp:3 * Hp])
        o = jax.nn.sigmoid(gates[:, 3 * Hp:4 * Hp])
        c_new = f * c + i * g
        h_new = o * jnp.tanh(c_new)
        return h_new, c_new

    def step(t, carry):
        h0, c0, h1, c1 = carry
        # Layer 0: only the recurrent matmul is on the critical path.
        g0 = xproj_ref[t] + jnp.dot(h0, wbig_ref[0:Hp, :],
                                    preferred_element_type=jnp.float32)
        h0, c0 = gates_to_hc(g0, c0)
        # Layer 1: single K-stacked matmul  [h0 | h1] @ [wih1 ; whh1].
        h01 = jnp.concatenate([h0, h1], axis=1)            # (Bp, 2*Hp) = one vreg row
        g1 = b1 + jnp.dot(h01, wbig_ref[Hp:3 * Hp, :],
                          preferred_element_type=jnp.float32)
        h1, c1 = gates_to_hc(g1, c1)
        return (h0, c0, h1, c1)

    z = jnp.zeros((Bp, Hp), jnp.float32)
    h0, c0, h1, c1 = jax.lax.fori_loop(
        0, T, step, (z, z, z, z), unroll=True if T <= 32 else 4)

    # Final fc: lane-dense (Bp, 128) store; only column 0 is meaningful.
    out_ref[...] = (jnp.dot(h1, wbig_ref[3 * Hp:4 * Hp, 0:128],
                            preferred_element_type=jnp.float32) + fcb)


# -----------------------------------------------------------------------------
# One-time parameter packing (outside the per-call path)
# -----------------------------------------------------------------------------
def pack_lstm_params(params, hidden_size=50, Hp=64):
    """Relayout torch-style LSTM params into two packed slabs (done once)."""
    H = hidden_size
    f32 = jnp.float32

    def gates_relayout(w, in_d, in_pad):
        # torch (4H, in_d), gates stacked i,f,g,o  ->  (in_pad, 4*Hp),
        # gate k occupying columns [k*Hp, k*Hp+H).  Padding stays exactly 0 so
        # padded hidden lanes never contribute (they remain 0 in the recurrence).
        w4 = jnp.asarray(w, f32).reshape(4, H, in_d)
        out = jnp.zeros((in_pad, 4 * Hp), f32)
        for k in range(4):
            out = out.at[:in_d, k * Hp:k * Hp + H].set(jnp.transpose(w4[k]))
        return out

    def bias_relayout(b):
        b4 = jnp.asarray(b, f32).reshape(4, H)
        out = jnp.zeros((1, 4 * Hp), f32)
        for k in range(4):
            out = out.at[0, k * Hp:k * Hp + H].set(b4[k])
        return out

    whh0 = gates_relayout(params["w_hh_l0"], H, Hp)          # (Hp, 4Hp)
    wih1 = gates_relayout(params["w_ih_l1"], H, Hp)          # (Hp, 4Hp)
    whh1 = gates_relayout(params["w_hh_l1"], H, Hp)          # (Hp, 4Hp)
    fcw = jnp.zeros((Hp, 4 * Hp), f32).at[:H, 0].set(
        jnp.asarray(params["fc_w"], f32)[0])                 # (Hp, 4Hp), col 0 real
    # Weight slab: rows [0:Hp)=whh0, [Hp:3Hp)=[wih1;whh1] (K-stacked), [3Hp:4Hp)=fcw.
    wbig = jnp.concatenate([whh0, wih1, whh1, fcw], axis=0)  # (4Hp, 4Hp)

    wih0 = gates_relayout(params["w_ih_l0"], 1, 1)           # (1, 4Hp)
    b0 = bias_relayout(params["b_ih_l0"] + params["b_hh_l0"])
    b1 = bias_relayout(params["b_ih_l1"] + params["b_hh_l1"])
    fcb = jnp.zeros((1, 4 * Hp), f32).at[0, 0].set(
        jnp.asarray(params["fc_b"], f32)[0])
    small = jnp.stack([wih0, b0, b1, fcb], axis=0)           # (4, 1, 4Hp)
    return wbig, small


# -----------------------------------------------------------------------------
# Forward wrapper
# -----------------------------------------------------------------------------
def lstm_model_forward(x, packed):
    """x: (B, T, 1) float32, packed = pack_lstm_params(...) -> (B, 1) float32."""
    wbig, small = packed
    Hp = wbig.shape[1] // 4
    B, T, in_dim = x.shape
    assert in_dim == 1
    Bp = max(8, ((B + 7) // 8) * 8)       # sublane-aligned batch
    f32 = jnp.float32

    # time-major, zero-padded batch
    xt = jnp.transpose(x.astype(f32), (1, 0, 2))             # (T, B, 1)
    xt = jnp.pad(xt, ((0, 0), (0, Bp - B), (0, 0)))          # (T, Bp, 1)

    def full_spec(shape):
        nd = len(shape)
        return pl.BlockSpec(shape, lambda i, _nd=nd: (0,) * _nd)

    out = pl.pallas_call(
        _lstm_kernel,
        out_shape=jax.ShapeDtypeStruct((Bp, 128), f32),
        grid_spec=pltpu.PrefetchScalarGridSpec(
            num_scalar_prefetch=0,
            grid=(1,),
            in_specs=[full_spec(xt.shape),
                      full_spec(wbig.shape),
                      full_spec(small.shape)],
            out_specs=full_spec((Bp, 128)),
            scratch_shapes=[pltpu.VMEM((T, Bp, 4 * Hp), f32)],
        ),
        compiler_params=pltpu.CompilerParams(
            dimension_semantics=("arbitrary",)),
    )(xt, wbig, small)

    return out[:B, 0:1]


# -----------------------------------------------------------------------------
# Pure-JAX reference (matches torch.nn.LSTM semantics) + params
# -----------------------------------------------------------------------------
def lstm_model_reference(x, params, H):
    B, T, _ = x.shape

    def cell(x_in, h, c, w_ih, w_hh, b_ih, b_hh):
        gates = x_in @ w_ih.T + b_ih + h @ w_hh.T + b_hh
        i = jax.nn.sigmoid(gates[:, :H])
        f = jax.nn.sigmoid(gates[:, H:2 * H])
        g = jnp.tanh(gates[:, 2 * H:3 * H])
        o = jax.nn.sigmoid(gates[:, 3 * H:])
        c = f * c + i * g
        h = o * jnp.tanh(c)
        return h, c

    z = jnp.zeros((B, H), jnp.float32)

    def step(carry, x_t):
        h0, c0, h1, c1 = carry
        h0, c0 = cell(x_t, h0, c0, params["w_ih_l0"], params["w_hh_l0"],
                      params["b_ih_l0"], params["b_hh_l0"])
        h1, c1 = cell(h0, h1, c1, params["w_ih_l1"], params["w_hh_l1"],
                      params["b_ih_l1"], params["b_hh_l1"])
        return (h0, c0, h1, c1), None

    (h0, c0, h1, c1), _ = jax.lax.scan(step, (z, z, z, z),
                                       jnp.transpose(x, (1, 0, 2)))
    return h1 @ params["fc_w"].T + params["fc_b"]


def init_params(key, hidden_size):
    H = hidden_size
    k = 1.0 / jnp.sqrt(jnp.float32(H))
    names_shapes = [
        ("w_ih_l0", (4 * H, 1)), ("w_hh_l0", (4 * H, H)),
        ("b_ih_l0", (4 * H,)), ("b_hh_l0", (4 * H,)),
        ("w_ih_l1", (4 * H, H)), ("w_hh_l1", (4 * H, H)),
        ("b_ih_l1", (4 * H,)), ("b_hh_l1", (4 * H,)),
        ("fc_w", (1, H)), ("fc_b", (1,)),
    ]
    params = {}
    keys = jax.random.split(key, len(names_shapes))
    for sub, (name, shape) in zip(keys, names_shapes):
        params[name] = jax.random.uniform(sub, shape, jnp.float32, -k, k)
    return params


if __name__ == "__main__":
    B, T, H = 8, 8, 50   # batch packed to one sublane group; H = module default
    key = jax.random.PRNGKey(0)
    kx, kp = jax.random.split(key)
    x = jax.random.normal(kx, (B, T, 1), jnp.float32)
    params = init_params(kp, H)

    # One-time relayout (kept out of the per-call path).
    packed = pack_lstm_params(params, H)
    packed = tuple(jax.block_until_ready(p) for p in packed)

    fwd = jax.jit(lstm_model_forward)
    out = jax.block_until_ready(fwd(x, packed))
    ref = jax.block_until_ready(lstm_model_reference(x, params, H))

    assert out.shape == (B, 1)
    assert jnp.allclose(out, ref, atol=1e-4, rtol=1e-4), (out, ref)

    print("KERNEL_OK")
</pallas_src>

<mosaic_0001>
module attributes {stable_mosaic.version = 11 : i64} {
  func.func @_lstm_kernel(%arg0: i32, %arg1: memref<8x8x1xf32, #tpu.memory_space<vmem>>, %arg2: memref<256x256xf32, #tpu.memory_space<vmem>>, %arg3: memref<4x1x256xf32, #tpu.memory_space<vmem>>, %arg4: memref<8x128xf32, #tpu.memory_space<vmem>>, %arg5: memref<8x8x256xf32, #tpu.memory_space<vmem>>) attributes {dimension_semantics = [#tpu.dimension_semantics<arbitrary>], iteration_bounds = array<i64: 1>, scalar_prefetch = 0 : i64, scratch_operands = 1 : i64, tpu.core_type = #tpu.core_type<tc>, window_params = [{pipeline_mode = #tpu.pipeline_mode<synchronous>, transform_indices = @transform_0, window_bounds = array<i64: 8, 8, 1>}, {pipeline_mode = #tpu.pipeline_mode<synchronous>, transform_indices = @transform_1, window_bounds = array<i64: 256, 256>}, {pipeline_mode = #tpu.pipeline_mode<synchronous>, transform_indices = @transform_2, window_bounds = array<i64: 4, 1, 256>}, {pipeline_mode = #tpu.pipeline_mode<synchronous>, transform_indices = @transform_3, window_bounds = array<i64: 8, 128>}]} {
    %c0 = arith.constant 0 : index
    %c0_0 = arith.constant 0 : index
    %c0_1 = arith.constant 0 : index
    %0 = vector.load %arg3[%c0, %c0_0, %c0_1] : memref<4x1x256xf32, #tpu.memory_space<vmem>>, vector<1x1x256xf32>
    %1 = vector.shape_cast %0 : vector<1x1x256xf32> to vector<1x256xf32>
    %c1 = arith.constant 1 : index
    %c0_2 = arith.constant 0 : index
    %c0_3 = arith.constant 0 : index
    %2 = vector.load %arg3[%c1, %c0_2, %c0_3] : memref<4x1x256xf32, #tpu.memory_space<vmem>>, vector<1x1x256xf32>
    %3 = vector.shape_cast %2 : vector<1x1x256xf32> to vector<1x256xf32>
    %c2 = arith.constant 2 : index
    %c0_4 = arith.constant 0 : index
    %c0_5 = arith.constant 0 : index
    %4 = vector.load %arg3[%c2, %c0_4, %c0_5] : memref<4x1x256xf32, #tpu.memory_space<vmem>>, vector<1x1x256xf32>
    %5 = vector.shape_cast %4 : vector<1x1x256xf32> to vector<1x256xf32>
    %6 = vector.shape_cast %5 : vector<1x256xf32> to vector<1x256xf32>
    %7 = vector.broadcast %6 : vector<1x256xf32> to vector<8x256xf32>
    %c3 = arith.constant 3 : index
    %c0_6 = arith.constant 0 : index
    %c0_7 = arith.constant 0 : index
    %8 = vector.load %arg3[%c3, %c0_6, %c0_7] : memref<4x1x256xf32, #tpu.memory_space<vmem>>, vector<1x1x256xf32>
    %9 = vector.shape_cast %8 : vector<1x1x256xf32> to vector<1x256xf32>
    %10 = vector.extract_strided_slice %9 {offsets = [0, 0], sizes = [1, 128], strides = [1, 1]} : vector<1x256xf32> to vector<1x128xf32>
    %c0_8 = arith.constant 0 : index
    %c0_9 = arith.constant 0 : index
    %c0_10 = arith.constant 0 : index
    %11 = vector.load %arg1[%c0_8, %c0_9, %c0_10] : memref<8x8x1xf32, #tpu.memory_space<vmem>>, vector<8x8x1xf32>
    %12 = vector.shape_cast %1 : vector<1x256xf32> to vector<1x1x256xf32>
    %13 = vector.broadcast %11 : vector<8x8x1xf32> to vector<8x8x256xf32>
    %14 = vector.broadcast %12 : vector<1x1x256xf32> to vector<8x8x256xf32>
    %15 = arith.mulf %13, %14 : vector<8x8x256xf32>
    %16 = vector.shape_cast %3 : vector<1x256xf32> to vector<1x1x256xf32>
    %17 = vector.broadcast %16 : vector<1x1x256xf32> to vector<8x8x256xf32>
    %18 = arith.addf %15, %17 : vector<8x8x256xf32>
    %c0_11 = arith.constant 0 : index
    %c0_12 = arith.constant 0 : index
    %c0_13 = arith.constant 0 : index
    %19 = vector.load %arg5[%c0_11, %c0_12, %c0_13] : memref<8x8x256xf32, #tpu.memory_space<vmem>>, vector<8x8x256xf32>
    tpu.vector_store %arg5[%c0_11, %c0_12, %c0_13], %18 {strides = array<i32>} : memref<8x8x256xf32, #tpu.memory_space<vmem>>, vector<8x8x256xf32>,
    %cst = arith.constant 0.000000e+00 : f32
    %20 = vector.broadcast %cst : f32 to vector<8x64xf32>
    %c0_i32 = arith.constant 0 : i32
    %21 = arith.index_cast %c0_i32 : i32 to index
    %c0_14 = arith.constant 0 : index
    %c0_15 = arith.constant 0 : index
    %22 = vector.load %arg5[%21, %c0_14, %c0_15] : memref<8x8x256xf32, #tpu.memory_space<vmem>>, vector<1x8x256xf32>
    %23 = vector.shape_cast %22 : vector<1x8x256xf32> to vector<8x256xf32>
    %c0_16 = arith.constant 0 : index
    %c0_17 = arith.constant 0 : index
    %24 = vector.load %arg2[%c0_16, %c0_17] : memref<256x256xf32, #tpu.memory_space<vmem>>, vector<64x256xf32>
    %cst_18 = arith.constant dense<0.000000e+00> : vector<8x256xf32>
    %25 = tpu.matmul %20, %24, %cst_18 {dimension_numbers = #tpu.dot_dimension_numbers<[1], [0], [0], [1], [0, 0, 1, 1], [], []>} : vector<8x64xf32>, vector<64x256xf32>, vector<8x256xf32> -> vector<8x256xf32>
    %26 = arith.addf %23, %25 : vector<8x256xf32>
    %27 = vector.extract_strided_slice %26 {offsets = [0, 0], sizes = [8, 64], strides = [1, 1]} : vector<8x256xf32> to vector<8x64xf32>
    %28 = arith.negf %27 : vector<8x64xf32>
    %29 = math.exp %28 : vector<8x64xf32>
    %cst_19 = arith.constant 1.000000e+00 : f32
    %30 = vector.broadcast %cst_19 : f32 to vector<8x64xf32>
    %31 = arith.addf %30, %29 : vector<8x64xf32>
    %32 = arith.divf %30, %31 : vector<8x64xf32>
    %33 = vector.extract_strided_slice %26 {offsets = [0, 64], sizes = [8, 64], strides = [1, 1]} : vector<8x256xf32> to vector<8x64xf32>
    %34 = arith.negf %33 : vector<8x64xf32>
    %35 = math.exp %34 : vector<8x64xf32>
    %cst_20 = arith.constant 1.000000e+00 : f32
    %36 = vector.broadcast %cst_20 : f32 to vector<8x64xf32>
    %37 = arith.addf %36, %35 : vector<8x64xf32>
    %38 = arith.divf %36, %37 : vector<8x64xf32>
    %39 = vector.extract_strided_slice %26 {offsets = [0, 128], sizes = [8, 64], strides = [1, 1]} : vector<8x256xf32> to vector<8x64xf32>
    %40 = math.tanh %39 : vector<8x64xf32>
    %41 = vector.extract_strided_slice %26 {offsets = [0, 192], sizes = [8, 64], strides = [1, 1]} : vector<8x256xf32> to vector<8x64xf32>
    %42 = arith.negf %41 : vector<8x64xf32>
    %43 = math.exp %42 : vector<8x64xf32>
    %cst_21 = arith.constant 1.000000e+00 : f32
    %44 = vector.broadcast %cst_21 : f32 to vector<8x64xf32>
    %45 = arith.addf %44, %43 : vector<8x64xf32>
    %46 = arith.divf %44, %45 : vector<8x64xf32>
    %47 = arith.mulf %38, %20 : vector<8x64xf32>
    %48 = arith.mulf %32, %40 : vector<8x64xf32>
    %49 = arith.addf %47, %48 : vector<8x64xf32>
    %50 = math.tanh %49 : vector<8x64xf32>
    %51 = arith.mulf %46, %50 : vector<8x64xf32>
    %52 = tpu.concatenate %51, %20 in 1 : vector<8x64xf32>, vector<8x64xf32> -> vector<8x128xf32>
    %c64 = arith.constant 64 : index
    %c0_22 = arith.constant 0 : index
    %53 = vector.load %arg2[%c64, %c0_22] : memref<256x256xf32, #tpu.memory_space<vmem>>, vector<128x256xf32>
    %cst_23 = arith.constant dense<0.000000e+00> : vector<8x256xf32>
    %54 = tpu.matmul %52, %53, %cst_23 {dimension_numbers = #tpu.dot_dimension_numbers<[1], [0], [0], [1], [0, 0, 1, 1], [], []>} : vector<8x128xf32>, vector<128x256xf32>, vector<8x256xf32> -> vector<8x256xf32>
    %55 = arith.addf %7, %54 : vector<8x256xf32>
    %56 = vector.extract_strided_slice %55 {offsets = [0, 0], sizes = [8, 64], strides = [1, 1]} : vector<8x256xf32> to vector<8x64xf32>
    %57 = arith.negf %56 : vector<8x64xf32>
    %58 = math.exp %57 : vector<8x64xf32>
    %cst_24 = arith.constant 1.000000e+00 : f32
    %59 = vector.broadcast %cst_24 : f32 to vector<8x64xf32>
    %60 = arith.addf %59, %58 : vector<8x64xf32>
    %61 = arith.divf %59, %60 : vector<8x64xf32>
    %62 = vector.extract_strided_slice %55 {offsets = [0, 64], sizes = [8, 64], strides = [1, 1]} : vector<8x256xf32> to vector<8x64xf32>
    %63 = arith.negf %62 : vector<8x64xf32>
    %64 = math.exp %63 : vector<8x64xf32>
    %cst_25 = arith.constant 1.000000e+00 : f32
    %65 = vector.broadcast %cst_25 : f32 to vector<8x64xf32>
    %66 = arith.addf %65, %64 : vector<8x64xf32>
    %67 = arith.divf %65, %66 : vector<8x64xf32>
    %68 = vector.extract_strided_slice %55 {offsets = [0, 128], sizes = [8, 64], strides = [1, 1]} : vector<8x256xf32> to vector<8x64xf32>
    %69 = math.tanh %68 : vector<8x64xf32>
    %70 = vector.extract_strided_slice %55 {offsets = [0, 192], sizes = [8, 64], strides = [1, 1]} : vector<8x256xf32> to vector<8x64xf32>
    %71 = arith.negf %70 : vector<8x64xf32>
    %72 = math.exp %71 : vector<8x64xf32>
    %cst_26 = arith.constant 1.000000e+00 : f32
    %73 = vector.broadcast %cst_26 : f32 to vector<8x64xf32>
    %74 = arith.addf %73, %72 : vector<8x64xf32>
    %75 = arith.divf %73, %74 : vector<8x64xf32>
    %76 = arith.mulf %67, %20 : vector<8x64xf32>
    %77 = arith.mulf %61, %69 : vector<8x64xf32>
    %78 = arith.addf %76, %77 : vector<8x64xf32>
    %79 = math.tanh %78 : vector<8x64xf32>
    %80 = arith.mulf %75, %79 : vector<8x64xf32>
    %c1_i32 = arith.constant 1 : i32
    %81 = arith.index_cast %c1_i32 : i32 to index
    %c0_27 = arith.constant 0 : index
    %c0_28 = arith.constant 0 : index
    %82 = vector.load %arg5[%81, %c0_27, %c0_28] : memref<8x8x256xf32, #tpu.memory_space<vmem>>, vector<1x8x256xf32>
    %83 = vector.shape_cast %82 : vector<1x8x256xf32> to vector<8x256xf32>
    %c0_29 = arith.constant 0 : index
    %c0_30 = arith.constant 0 : index
    %84 = vector.load %arg2[%c0_29, %c0_30] : memref<256x256xf32, #tpu.memory_space<vmem>>, vector<64x256xf32>
    %cst_31 = arith.constant dense<0.000000e+00> : vector<8x256xf32>
    %85 = tpu.matmul %51, %84, %cst_31 {dimension_numbers = #tpu.dot_dimension_numbers<[1], [0], [0], [1], [0, 0, 1, 1], [], []>} : vector<8x64xf32>, vector<64x256xf32>, vector<8x256xf32> -> vector<8x256xf32>
    %86 = arith.addf %83, %85 : vector<8x256xf32>
    %87 = vector.extract_strided_slice %86 {offsets = [0, 0], sizes = [8, 64], strides = [1, 1]} : vector<8x256xf32> to vector<8x64xf32>
    %88 = arith.negf %87 : vector<8x64xf32>
    %89 = math.exp %88 : vector<8x64xf32>
    %cst_32 = arith.constant 1.000000e+00 : f32
    %90 = vector.broadcast %cst_32 : f32 to vector<8x64xf32>
    %91 = arith.addf %90, %89 : vector<8x64xf32>
    %92 = arith.divf %90, %91 : vector<8x64xf32>
    %93 = vector.extract_strided_slice %86 {offsets = [0, 64], sizes = [8, 64], strides = [1, 1]} : vector<8x256xf32> to vector<8x64xf32>
    %94 = arith.negf %93 : vector<8x64xf32>
    %95 = math.exp %94 : vector<8x64xf32>
    %cst_33 = arith.constant 1.000000e+00 : f32
    %96 = vector.broadcast %cst_33 : f32 to vector<8x64xf32>
    %97 = arith.addf %96, %95 : vector<8x64xf32>
    %98 = arith.divf %96, %97 : vector<8x64xf32>
    %99 = vector.extract_strided_slice %86 {offsets = [0, 128], sizes = [8, 64], strides = [1, 1]} : vector<8x256xf32> to vector<8x64xf32>
    %100 = math.tanh %99 : vector<8x64xf32>
    %101 = vector.extract_strided_slice %86 {offsets = [0, 192], sizes = [8, 64], strides = [1, 1]} : vector<8x256xf32> to vector<8x64xf32>
    %102 = arith.negf %101 : vector<8x64xf32>
    %103 = math.exp %102 : vector<8x64xf32>
    %cst_34 = arith.constant 1.000000e+00 : f32
    %104 = vector.broadcast %cst_34 : f32 to vector<8x64xf32>
    %105 = arith.addf %104, %103 : vector<8x64xf32>
    %106 = arith.divf %104, %105 : vector<8x64xf32>
    %107 = arith.mulf %98, %49 : vector<8x64xf32>
    %108 = arith.mulf %92, %100 : vector<8x64xf32>
    %109 = arith.addf %107, %108 : vector<8x64xf32>
    %110 = math.tanh %109 : vector<8x64xf32>
    %111 = arith.mulf %106, %110 : vector<8x64xf32>
    %112 = tpu.concatenate %111, %80 in 1 : vector<8x64xf32>, vector<8x64xf32> -> vector<8x128xf32>
    %c64_35 = arith.constant 64 : index
    %c0_36 = arith.constant 0 : index
    %113 = vector.load %arg2[%c64_35, %c0_36] : memref<256x256xf32, #tpu.memory_space<vmem>>, vector<128x256xf32>
    %cst_37 = arith.constant dense<0.000000e+00> : vector<8x256xf32>
    %114 = tpu.matmul %112, %113, %cst_37 {dimension_numbers = #tpu.dot_dimension_numbers<[1], [0], [0], [1], [0, 0, 1, 1], [], []>} : vector<8x128xf32>, vector<128x256xf32>, vector<8x256xf32> -> vector<8x256xf32>
    %115 = arith.addf %7, %114 : vector<8x256xf32>
    %116 = vector.extract_strided_slice %115 {offsets = [0, 0], sizes = [8, 64], strides = [1, 1]} : vector<8x256xf32> to vector<8x64xf32>
    %117 = arith.negf %116 : vector<8x64xf32>
    %118 = math.exp %117 : vector<8x64xf32>
    %cst_38 = arith.constant 1.000000e+00 : f32
    %119 = vector.broadcast %cst_38 : f32 to vector<8x64xf32>
    %120 = arith.addf %119, %118 : vector<8x64xf32>
    %121 = arith.divf %119, %120 : vector<8x64xf32>
    %122 = vector.extract_strided_slice %115 {offsets = [0, 64], sizes = [8, 64], strides = [1, 1]} : vector<8x256xf32> to vector<8x64xf32>
    %123 = arith.negf %122 : vector<8x64xf32>
    %124 = math.exp %123 : vector<8x64xf32>
    %cst_39 = arith.constant 1.000000e+00 : f32
    %125 = vector.broadcast %cst_39 : f32 to vector<8x64xf32>
    %126 = arith.addf %125, %124 : vector<8x64xf32>
    %127 = arith.divf %125, %126 : vector<8x64xf32>
    %128 = vector.extract_strided_slice %115 {offsets = [0, 128], sizes = [8, 64], strides = [1, 1]} : vector<8x256xf32> to vector<8x64xf32>
    %129 = math.tanh %128 : vector<8x64xf32>
    %130 = vector.extract_strided_slice %115 {offsets = [0, 192], sizes = [8, 64], strides = [1, 1]} : vector<8x256xf32> to vector<8x64xf32>
    %131 = arith.negf %130 : vector<8x64xf32>
    %132 = math.exp %131 : vector<8x64xf32>
    %cst_40 = arith.constant 1.000000e+00 : f32
    %133 = vector.broadcast %cst_40 : f32 to vector<8x64xf32>
    %134 = arith.addf %133, %132 : vector<8x64xf32>
    %135 = arith.divf %133, %134 : vector<8x64xf32>
    %136 = arith.mulf %127, %78 : vector<8x64xf32>
    %137 = arith.mulf %121, %129 : vector<8x64xf32>
    %138 = arith.addf %136, %137 : vector<8x64xf32>
    %139 = math.tanh %138 : vector<8x64xf32>
    %140 = arith.mulf %135, %139 : vector<8x64xf32>
    %c2_i32 = arith.constant 2 : i32
    %141 = arith.index_cast %c2_i32 : i32 to index
    %c0_41 = arith.constant 0 : index
    %c0_42 = arith.constant 0 : index
    %142 = vector.load %arg5[%141, %c0_41, %c0_42] : memref<8x8x256xf32, #tpu.memory_space<vmem>>, vector<1x8x256xf32>
    %143 = vector.shape_cast %142 : vector<1x8x256xf32> to vector<8x256xf32>
    %c0_43 = arith.constant 0 : index
    %c0_44 = arith.constant 0 : index
    %144 = vector.load %arg2[%c0_43, %c0_44] : memref<256x256xf32, #tpu.memory_space<vmem>>, vector<64x256xf32>
    %cst_45 = arith.constant dense<0.000000e+00> : vector<8x256xf32>
    %145 = tpu.matmul %111, %144, %cst_45 {dimension_numbers = #tpu.dot_dimension_numbers<[1], [0], [0], [1], [0, 0, 1, 1], [], []>} : vector<8x64xf32>, vector<64x256xf32>, vector<8x256xf32> -> vector<8x256xf32>
    %146 = arith.addf %143, %145 : vector<8x256xf32>
    %147 = vector.extract_strided_slice %146 {offsets = [0, 0], sizes = [8, 64], strides = [1, 1]} : vector<8x256xf32> to vector<8x64xf32>
    %148 = arith.negf %147 : vector<8x64xf32>
    %149 = math.exp %148 : vector<8x64xf32>
    %cst_46 = arith.constant 1.000000e+00 : f32
    %150 = vector.broadcast %cst_46 : f32 to vector<8x64xf32>
    %151 = arith.addf %150, %149 : vector<8x64xf32>
    %152 = arith.divf %150, %151 : vector<8x64xf32>
    %153 = vector.extract_strided_slice %146 {offsets = [0, 64], sizes = [8, 64], strides = [1, 1]} : vector<8x256xf32> to vector<8x64xf32>
    %154 = arith.negf %153 : vector<8x64xf32>
    %155 = math.exp %154 : vector<8x64xf32>
    %cst_47 = arith.constant 1.000000e+00 : f32
    %156 = vector.broadcast %cst_47 : f32 to vector<8x64xf32>
    %157 = arith.addf %156, %155 : vector<8x64xf32>
    %158 = arith.divf %156, %157 : vector<8x64xf32>
    %159 = vector.extract_strided_slice %146 {offsets = [0, 128], sizes = [8, 64], strides = [1, 1]} : vector<8x256xf32> to vector<8x64xf32>
    %160 = math.tanh %159 : vector<8x64xf32>
    %161 = vector.extract_strided_slice %146 {offsets = [0, 192], sizes = [8, 64], strides = [1, 1]} : vector<8x256xf32> to vector<8x64xf32>
    %162 = arith.negf %161 : vector<8x64xf32>
    %163 = math.exp %162 : vector<8x64xf32>
    %cst_48 = arith.constant 1.000000e+00 : f32
    %164 = vector.broadcast %cst_48 : f32 to vector<8x64xf32>
    %165 = arith.addf %164, %163 : vector<8x64xf32>
    %166 = arith.divf %164, %165 : vector<8x64xf32>
    %167 = arith.mulf %158, %109 : vector<8x64xf32>
    %168 = arith.mulf %152, %160 : vector<8x64xf32>
    %169 = arith.addf %167, %168 : vector<8x64xf32>
    %170 = math.tanh %169 : vector<8x64xf32>
    %171 = arith.mulf %166, %170 : vector<8x64xf32>
    %172 = tpu.concatenate %171, %140 in 1 : vector<8x64xf32>, vector<8x64xf32> -> vector<8x128xf32>
    %c64_49 = arith.constant 64 : index
    %c0_50 = arith.constant 0 : index
    %173 = vector.load %arg2[%c64_49, %c0_50] : memref<256x256xf32, #tpu.memory_space<vmem>>, vector<128x256xf32>
    %cst_51 = arith.constant dense<0.000000e+00> : vector<8x256xf32>
    %174 = tpu.matmul %172, %173, %cst_51 {dimension_numbers = #tpu.dot_dimension_numbers<[1], [0], [0], [1], [0, 0, 1, 1], [], []>} : vector<8x128xf32>, vector<128x256xf32>, vector<8x256xf32> -> vector<8x256xf32>
    %175 = arith.addf %7, %174 : vector<8x256xf32>
    %176 = vector.extract_strided_slice %175 {offsets = [0, 0], sizes = [8, 64], strides = [1, 1]} : vector<8x256xf32> to vector<8x64xf32>
    %177 = arith.negf %176 : vector<8x64xf32>
    %178 = math.exp %177 : vector<8x64xf32>
    %cst_52 = arith.constant 1.000000e+00 : f32
    %179 = vector.broadcast %cst_52 : f32 to vector<8x64xf32>
    %180 = arith.addf %179, %178 : vector<8x64xf32>
    %181 = arith.divf %179, %180 : vector<8x64xf32>
    %182 = vector.extract_strided_slice %175 {offsets = [0, 64], sizes = [8, 64], strides = [1, 1]} : vector<8x256xf32> to vector<8x64xf32>
    %183 = arith.negf %182 : vector<8x64xf32>
    %184 = math.exp %183 : vector<8x64xf32>
    %cst_53 = arith.constant 1.000000e+00 : f32
    %185 = vector.broadcast %cst_53 : f32 to vector<8x64xf32>
    %186 = arith.addf %185, %184 : vector<8x64xf32>
    %187 = arith.divf %185, %186 : vector<8x64xf32>
    %188 = vector.extract_strided_slice %175 {offsets = [0, 128], sizes = [8, 64], strides = [1, 1]} : vector<8x256xf32> to vector<8x64xf32>
    %189 = math.tanh %188 : vector<8x64xf32>
    %190 = vector.extract_strided_slice %175 {offsets = [0, 192], sizes = [8, 64], strides = [1, 1]} : vector<8x256xf32> to vector<8x64xf32>
    %191 = arith.negf %190 : vector<8x64xf32>
    %192 = math.exp %191 : vector<8x64xf32>
    %cst_54 = arith.constant 1.000000e+00 : f32
    %193 = vector.broadcast %cst_54 : f32 to vector<8x64xf32>
    %194 = arith.addf %193, %192 : vector<8x64xf32>
    %195 = arith.divf %193, %194 : vector<8x64xf32>
    %196 = arith.mulf %187, %138 : vector<8x64xf32>
    %197 = arith.mulf %181, %189 : vector<8x64xf32>
    %198 = arith.addf %196, %197 : vector<8x64xf32>
    %199 = math.tanh %198 : vector<8x64xf32>
    %200 = arith.mulf %195, %199 : vector<8x64xf32>
    %c3_i32 = arith.constant 3 : i32
    %201 = arith.index_cast %c3_i32 : i32 to index
    %c0_55 = arith.constant 0 : index
    %c0_56 = arith.constant 0 : index
    %202 = vector.load %arg5[%201, %c0_55, %c0_56] : memref<8x8x256xf32, #tpu.memory_space<vmem>>, vector<1x8x256xf32>
    %203 = vector.shape_cast %202 : vector<1x8x256xf32> to vector<8x256xf32>
    %c0_57 = arith.constant 0 : index
    %c0_58 = arith.constant 0 : index
    %204 = vector.load %arg2[%c0_57, %c0_58] : memref<256x256xf32, #tpu.memory_space<vmem>>, vector<64x256xf32>
    %cst_59 = arith.constant dense<0.000000e+00> : vector<8x256xf32>
    %205 = tpu.matmul %171, %204, %cst_59 {dimension_numbers = #tpu.dot_dimension_numbers<[1], [0], [0], [1], [0, 0, 1, 1], [], []>} : vector<8x64xf32>, vector<64x256xf32>, vector<8x256xf32> -> vector<8x256xf32>
    %206 = arith.addf %203, %205 : vector<8x256xf32>
    %207 = vector.extract_strided_slice %206 {offsets = [0, 0], sizes = [8, 64], strides = [1, 1]} : vector<8x256xf32> to vector<8x64xf32>
    %208 = arith.negf %207 : vector<8x64xf32>
    %209 = math.exp %208 : vector<8x64xf32>
    %cst_60 = arith.constant 1.000000e+00 : f32
    %210 = vector.broadcast %cst_60 : f32 to vector<8x64xf32>
    %211 = arith.addf %210, %209 : vector<8x64xf32>
    %212 = arith.divf %210, %211 : vector<8x64xf32>
    %213 = vector.extract_strided_slice %206 {offsets = [0, 64], sizes = [8, 64], strides = [1, 1]} : vector<8x256xf32> to vector<8x64xf32>
    %214 = arith.negf %213 : vector<8x64xf32>
    %215 = math.exp %214 : vector<8x64xf32>
    %cst_61 = arith.constant 1.000000e+00 : f32
    %216 = vector.broadcast %cst_61 : f32 to vector<8x64xf32>
    %217 = arith.addf %216, %215 : vector<8x64xf32>
    %218 = arith.divf %216, %217 : vector<8x64xf32>
    %219 = vector.extract_strided_slice %206 {offsets = [0, 128], sizes = [8, 64], strides = [1, 1]} : vector<8x256xf32> to vector<8x64xf32>
    %220 = math.tanh %219 : vector<8x64xf32>
    %221 = vector.extract_strided_slice %206 {offsets = [0, 192], sizes = [8, 64], strides = [1, 1]} : vector<8x256xf32> to vector<8x64xf32>
    %222 = arith.negf %221 : vector<8x64xf32>
    %223 = math.exp %222 : vector<8x64xf32>
    %cst_62 = arith.constant 1.000000e+00 : f32
    %224 = vector.broadcast %cst_62 : f32 to vector<8x64xf32>
    %225 = arith.addf %224, %223 : vector<8x64xf32>
    %226 = arith.divf %224, %225 : vector<8x64xf32>
    %227 = arith.mulf %218, %169 : vector<8x64xf32>
    %228 = arith.mulf %212, %220 : vector<8x64xf32>
    %229 = arith.addf %227, %228 : vector<8x64xf32>
    %230 = math.tanh %229 : vector<8x64xf32>
    %231 = arith.mulf %226, %230 : vector<8x64xf32>
    %232 = tpu.concatenate %231, %200 in 1 : vector<8x64xf32>, vector<8x64xf32> -> vector<8x128xf32>
    %c64_63 = arith.constant 64 : index
    %c0_64 = arith.constant 0 : index
    %233 = vector.load %arg2[%c64_63, %c0_64] : memref<256x256xf32, #tpu.memory_space<vmem>>, vector<128x256xf32>
    %cst_65 = arith.constant dense<0.000000e+00> : vector<8x256xf32>
    %234 = tpu.matmul %232, %233, %cst_65 {dimension_numbers = #tpu.dot_dimension_numbers<[1], [0], [0], [1], [0, 0, 1, 1], [], []>} : vector<8x128xf32>, vector<128x256xf32>, vector<8x256xf32> -> vector<8x256xf32>
    %235 = arith.addf %7, %234 : vector<8x256xf32>
    %236 = vector.extract_strided_slice %235 {offsets = [0, 0], sizes = [8, 64], strides = [1, 1]} : vector<8x256xf32> to vector<8x64xf32>
    %237 = arith.negf %236 : vector<8x64xf32>
    %238 = math.exp %237 : vector<8x64xf32>
    %cst_66 = arith.constant 1.000000e+00 : f32
    %239 = vector.broadcast %cst_66 : f32 to vector<8x64xf32>
    %240 = arith.addf %239, %238 : vector<8x64xf32>
    %241 = arith.divf %239, %240 : vector<8x64xf32>
    %242 = vector.extract_strided_slice %235 {offsets = [0, 64], sizes = [8, 64], strides = [1, 1]} : vector<8x256xf32> to vector<8x64xf32>
    %243 = arith.negf %242 : vector<8x64xf32>
    %244 = math.exp %243 : vector<8x64xf32>
    %cst_67 = arith.constant 1.000000e+00 : f32
    %245 = vector.broadcast %cst_67 : f32 to vector<8x64xf32>
    %246 = arith.addf %245, %244 : vector<8x64xf32>
    %247 = arith.divf %245, %246 : vector<8x64xf32>
    %248 = vector.extract_strided_slice %235 {offsets = [0, 128], sizes = [8, 64], strides = [1, 1]} : vector<8x256xf32> to vector<8x64xf32>
    %249 = math.tanh %248 : vector<8x64xf32>
    %250 = vector.extract_strided_slice %235 {offsets = [0, 192], sizes = [8, 64], strides = [1, 1]} : vector<8x256xf32> to vector<8x64xf32>
    %251 = arith.negf %250 : vector<8x64xf32>
    %252 = math.exp %251 : vector<8x64xf32>
    %cst_68 = arith.constant 1.000000e+00 : f32
    %253 = vector.broadcast %cst_68 : f32 to vector<8x64xf32>
    %254 = arith.addf %253, %252 : vector<8x64xf32>
    %255 = arith.divf %253, %254 : vector<8x64xf32>
    %256 = arith.mulf %247, %198 : vector<8x64xf32>
    %257 = arith.mulf %241, %249 : vector<8x64xf32>
    %258 = arith.addf %256, %257 : vector<8x64xf32>
    %259 = math.tanh %258 : vector<8x64xf32>
    %260 = arith.mulf %255, %259 : vector<8x64xf32>
    %c4_i32 = arith.constant 4 : i32
    %261 = arith.index_cast %c4_i32 : i32 to index
    %c0_69 = arith.constant 0 : index
    %c0_70 = arith.constant 0 : index
    %262 = vector.load %arg5[%261, %c0_69, %c0_70] : memref<8x8x256xf32, #tpu.memory_space<vmem>>, vector<1x8x256xf32>
    %263 = vector.shape_cast %262 : vector<1x8x256xf32> to vector<8x256xf32>
    %c0_71 = arith.constant 0 : index
    %c0_72 = arith.constant 0 : index
    %264 = vector.load %arg2[%c0_71, %c0_72] : memref<256x256xf32, #tpu.memory_space<vmem>>, vector<64x256xf32>
    %cst_73 = arith.constant dense<0.000000e+00> : vector<8x256xf32>
    %265 = tpu.matmul %231, %264, %cst_73 {dimension_numbers = #tpu.dot_dimension_numbers<[1], [0], [0], [1], [0, 0, 1, 1], [], []>} : vector<8x64xf32>, vector<64x256xf32>, vector<8x256xf32> -> vector<8x256xf32>
    %266 = arith.addf %263, %265 : vector<8x256xf32>
    %267 = vector.extract_strided_slice %266 {offsets = [0, 0], sizes = [8, 64], strides = [1, 1]} : vector<8x256xf32> to vector<8x64xf32>
    %268 = arith.negf %267 : vector<8x64xf32>
    %269 = math.exp %268 : vector<8x64xf32>
    %cst_74 = arith.constant 1.000000e+00 : f32
    %270 = vector.broadcast %cst_74 : f32 to vector<8x64xf32>
    %271 = arith.addf %270, %269 : vector<8x64xf32>
    %272 = arith.divf %270, %271 : vector<8x64xf32>
    %273 = vector.extract_strided_slice %266 {offsets = [0, 64], sizes = [8, 64], strides = [1, 1]} : vector<8x256xf32> to vector<8x64xf32>
    %274 = arith.negf %273 : vector<8x64xf32>
    %275 = math.exp %274 : vector<8x64xf32>
    %cst_75 = arith.constant 1.000000e+00 : f32
    %276 = vector.broadcast %cst_75 : f32 to vector<8x64xf32>
    %277 = arith.addf %276, %275 : vector<8x64xf32>
    %278 = arith.divf %276, %277 : vector<8x64xf32>
    %279 = vector.extract_strided_slice %266 {offsets = [0, 128], sizes = [8, 64], strides = [1, 1]} : vector<8x256xf32> to vector<8x64xf32>
    %280 = math.tanh %279 : vector<8x64xf32>
    %281 = vector.extract_strided_slice %266 {offsets = [0, 192], sizes = [8, 64], strides = [1, 1]} : vector<8x256xf32> to vector<8x64xf32>
    %282 = arith.negf %281 : vector<8x64xf32>
    %283 = math.exp %282 : vector<8x64xf32>
    %cst_76 = arith.constant 1.000000e+00 : f32
    %284 = vector.broadcast %cst_76 : f32 to vector<8x64xf32>
    %285 = arith.addf %284, %283 : vector<8x64xf32>
    %286 = arith.divf %284, %285 : vector<8x64xf32>
    %287 = arith.mulf %278, %229 : vector<8x64xf32>
    %288 = arith.mulf %272, %280 : vector<8x64xf32>
    %289 = arith.addf %287, %288 : vector<8x64xf32>
    %290 = math.tanh %289 : vector<8x64xf32>
    %291 = arith.mulf %286, %290 : vector<8x64xf32>
    %292 = tpu.concatenate %291, %260 in 1 : vector<8x64xf32>, vector<8x64xf32> -> vector<8x128xf32>
    %c64_77 = arith.constant 64 : index
    %c0_78 = arith.constant 0 : index
    %293 = vector.load %arg2[%c64_77, %c0_78] : memref<256x256xf32, #tpu.memory_space<vmem>>, vector<128x256xf32>
    %cst_79 = arith.constant dense<0.000000e+00> : vector<8x256xf32>
    %294 = tpu.matmul %292, %293, %cst_79 {dimension_numbers = #tpu.dot_dimension_numbers<[1], [0], [0], [1], [0, 0, 1, 1], [], []>} : vector<8x128xf32>, vector<128x256xf32>, vector<8x256xf32> -> vector<8x256xf32>
    %295 = arith.addf %7, %294 : vector<8x256xf32>
    %296 = vector.extract_strided_slice %295 {offsets = [0, 0], sizes = [8, 64], strides = [1, 1]} : vector<8x256xf32> to vector<8x64xf32>
    %297 = arith.negf %296 : vector<8x64xf32>
    %298 = math.exp %297 : vector<8x64xf32>
    %cst_80 = arith.constant 1.000000e+00 : f32
    %299 = vector.broadcast %cst_80 : f32 to vector<8x64xf32>
    %300 = arith.addf %299, %298 : vector<8x64xf32>
    %301 = arith.divf %299, %300 : vector<8x64xf32>
    %302 = vector.extract_strided_slice %295 {offsets = [0, 64], sizes = [8, 64], strides = [1, 1]} : vector<8x256xf32> to vector<8x64xf32>
    %303 = arith.negf %302 : vector<8x64xf32>
    %304 = math.exp %303 : vector<8x64xf32>
    %cst_81 = arith.constant 1.000000e+00 : f32
    %305 = vector.broadcast %cst_81 : f32 to vector<8x64xf32>
    %306 = arith.addf %305, %304 : vector<8x64xf32>
    %307 = arith.divf %305, %306 : vector<8x64xf32>
    %308 = vector.extract_strided_slice %295 {offsets = [0, 128], sizes = [8, 64], strides = [1, 1]} : vector<8x256xf32> to vector<8x64xf32>
    %309 = math.tanh %308 : vector<8x64xf32>
    %310 = vector.extract_strided_slice %295 {offsets = [0, 192], sizes = [8, 64], strides = [1, 1]} : vector<8x256xf32> to vector<8x64xf32>
    %311 = arith.negf %310 : vector<8x64xf32>
    %312 = math.exp %311 : vector<8x64xf32>
    %cst_82 = arith.constant 1.000000e+00 : f32
    %313 = vector.broadcast %cst_82 : f32 to vector<8x64xf32>
    %314 = arith.addf %313, %312 : vector<8x64xf32>
    %315 = arith.divf %313, %314 : vector<8x64xf32>
    %316 = arith.mulf %307, %258 : vector<8x64xf32>
    %317 = arith.mulf %301, %309 : vector<8x64xf32>
    %318 = arith.addf %316, %317 : vector<8x64xf32>
    %319 = math.tanh %318 : vector<8x64xf32>
    %320 = arith.mulf %315, %319 : vector<8x64xf32>
    %c5_i32 = arith.constant 5 : i32
    %321 = arith.index_cast %c5_i32 : i32 to index
    %c0_83 = arith.constant 0 : index
    %c0_84 = arith.constant 0 : index
    %322 = vector.load %arg5[%321, %c0_83, %c0_84] : memref<8x8x256xf32, #tpu.memory_space<vmem>>, vector<1x8x256xf32>
    %323 = vector.shape_cast %322 : vector<1x8x256xf32> to vector<8x256xf32>
    %c0_85 = arith.constant 0 : index
    %c0_86 = arith.constant 0 : index
    %324 = vector.load %arg2[%c0_85, %c0_86] : memref<256x256xf32, #tpu.memory_space<vmem>>, vector<64x256xf32>
    %cst_87 = arith.constant dense<0.000000e+00> : vector<8x256xf32>
    %325 = tpu.matmul %291, %324, %cst_87 {dimension_numbers = #tpu.dot_dimension_numbers<[1], [0], [0], [1], [0, 0, 1, 1], [], []>} : vector<8x64xf32>, vector<64x256xf32>, vector<8x256xf32> -> vector<8x256xf32>
    %326 = arith.addf %323, %325 : vector<8x256xf32>
    %327 = vector.extract_strided_slice %326 {offsets = [0, 0], sizes = [8, 64], strides = [1, 1]} : vector<8x256xf32> to vector<8x64xf32>
    %328 = arith.negf %327 : vector<8x64xf32>
    %329 = math.exp %328 : vector<8x64xf32>
    %cst_88 = arith.constant 1.000000e+00 : f32
    %330 = vector.broadcast %cst_88 : f32 to vector<8x64xf32>
    %331 = arith.addf %330, %329 : vector<8x64xf32>
    %332 = arith.divf %330, %331 : vector<8x64xf32>
    %333 = vector.extract_strided_slice %326 {offsets = [0, 64], sizes = [8, 64], strides = [1, 1]} : vector<8x256xf32> to vector<8x64xf32>
    %334 = arith.negf %333 : vector<8x64xf32>
    %335 = math.exp %334 : vector<8x64xf32>
    %cst_89 = arith.constant 1.000000e+00 : f32
    %336 = vector.broadcast %cst_89 : f32 to vector<8x64xf32>
    %337 = arith.addf %336, %335 : vector<8x64xf32>
    %338 = arith.divf %336, %337 : vector<8x64xf32>
    %339 = vector.extract_strided_slice %326 {offsets = [0, 128], sizes = [8, 64], strides = [1, 1]} : vector<8x256xf32> to vector<8x64xf32>
    %340 = math.tanh %339 : vector<8x64xf32>
    %341 = vector.extract_strided_slice %326 {offsets = [0, 192], sizes = [8, 64], strides = [1, 1]} : vector<8x256xf32> to vector<8x64xf32>
    %342 = arith.negf %341 : vector<8x64xf32>
    %343 = math.exp %342 : vector<8x64xf32>
    %cst_90 = arith.constant 1.000000e+00 : f32
    %344 = vector.broadcast %cst_90 : f32 to vector<8x64xf32>
    %345 = arith.addf %344, %343 : vector<8x64xf32>
    %346 = arith.divf %344, %345 : vector<8x64xf32>
    %347 = arith.mulf %338, %289 : vector<8x64xf32>
    %348 = arith.mulf %332, %340 : vector<8x64xf32>
    %349 = arith.addf %347, %348 : vector<8x64xf32>
    %350 = math.tanh %349 : vector<8x64xf32>
    %351 = arith.mulf %346, %350 : vector<8x64xf32>
    %352 = tpu.concatenate %351, %320 in 1 : vector<8x64xf32>, vector<8x64xf32> -> vector<8x128xf32>
    %c64_91 = arith.constant 64 : index
    %c0_92 = arith.constant 0 : index
    %353 = vector.load %arg2[%c64_91, %c0_92] : memref<256x256xf32, #tpu.memory_space<vmem>>, vector<128x256xf32>
    %cst_93 = arith.constant dense<0.000000e+00> : vector<8x256xf32>
    %354 = tpu.matmul %352, %353, %cst_93 {dimension_numbers = #tpu.dot_dimension_numbers<[1], [0], [0], [1], [0, 0, 1, 1], [], []>} : vector<8x128xf32>, vector<128x256xf32>, vector<8x256xf32> -> vector<8x256xf32>
    %355 = arith.addf %7, %354 : vector<8x256xf32>
    %356 = vector.extract_strided_slice %355 {offsets = [0, 0], sizes = [8, 64], strides = [1, 1]} : vector<8x256xf32> to vector<8x64xf32>
    %357 = arith.negf %356 : vector<8x64xf32>
    %358 = math.exp %357 : vector<8x64xf32>
    %cst_94 = arith.constant 1.000000e+00 : f32
    %359 = vector.broadcast %cst_94 : f32 to vector<8x64xf32>
    %360 = arith.addf %359, %358 : vector<8x64xf32>
    %361 = arith.divf %359, %360 : vector<8x64xf32>
    %362 = vector.extract_strided_slice %355 {offsets = [0, 64], sizes = [8, 64], strides = [1, 1]} : vector<8x256xf32> to vector<8x64xf32>
    %363 = arith.negf %362 : vector<8x64xf32>
    %364 = math.exp %363 : vector<8x64xf32>
    %cst_95 = arith.constant 1.000000e+00 : f32
    %365 = vector.broadcast %cst_95 : f32 to vector<8x64xf32>
    %366 = arith.addf %365, %364 : vector<8x64xf32>
    %367 = arith.divf %365, %366 : vector<8x64xf32>
    %368 = vector.extract_strided_slice %355 {offsets = [0, 128], sizes = [8, 64], strides = [1, 1]} : vector<8x256xf32> to vector<8x64xf32>
    %369 = math.tanh %368 : vector<8x64xf32>
    %370 = vector.extract_strided_slice %355 {offsets = [0, 192], sizes = [8, 64], strides = [1, 1]} : vector<8x256xf32> to vector<8x64xf32>
    %371 = arith.negf %370 : vector<8x64xf32>
    %372 = math.exp %371 : vector<8x64xf32>
    %cst_96 = arith.constant 1.000000e+00 : f32
    %373 = vector.broadcast %cst_96 : f32 to vector<8x64xf32>
    %374 = arith.addf %373, %372 : vector<8x64xf32>
    %375 = arith.divf %373, %374 : vector<8x64xf32>
    %376 = arith.mulf %367, %318 : vector<8x64xf32>
    %377 = arith.mulf %361, %369 : vector<8x64xf32>
    %378 = arith.addf %376, %377 : vector<8x64xf32>
    %379 = math.tanh %378 : vector<8x64xf32>
    %380 = arith.mulf %375, %379 : vector<8x64xf32>
    %c6_i32 = arith.constant 6 : i32
    %381 = arith.index_cast %c6_i32 : i32 to index
    %c0_97 = arith.constant 0 : index
    %c0_98 = arith.constant 0 : index
    %382 = vector.load %arg5[%381, %c0_97, %c0_98] : memref<8x8x256xf32, #tpu.memory_space<vmem>>, vector<1x8x256xf32>
    %383 = vector.shape_cast %382 : vector<1x8x256xf32> to vector<8x256xf32>
    %c0_99 = arith.constant 0 : index
    %c0_100 = arith.constant 0 : index
    %384 = vector.load %arg2[%c0_99, %c0_100] : memref<256x256xf32, #tpu.memory_space<vmem>>, vector<64x256xf32>
    %cst_101 = arith.constant dense<0.000000e+00> : vector<8x256xf32>
    %385 = tpu.matmul %351, %384, %cst_101 {dimension_numbers = #tpu.dot_dimension_numbers<[1], [0], [0], [1], [0, 0, 1, 1], [], []>} : vector<8x64xf32>, vector<64x256xf32>, vector<8x256xf32> -> vector<8x256xf32>
    %386 = arith.addf %383, %385 : vector<8x256xf32>
    %387 = vector.extract_strided_slice %386 {offsets = [0, 0], sizes = [8, 64], strides = [1, 1]} : vector<8x256xf32> to vector<8x64xf32>
    %388 = arith.negf %387 : vector<8x64xf32>
    %389 = math.exp %388 : vector<8x64xf32>
    %cst_102 = arith.constant 1.000000e+00 : f32
    %390 = vector.broadcast %cst_102 : f32 to vector<8x64xf32>
    %391 = arith.addf %390, %389 : vector<8x64xf32>
    %392 = arith.divf %390, %391 : vector<8x64xf32>
    %393 = vector.extract_strided_slice %386 {offsets = [0, 64], sizes = [8, 64], strides = [1, 1]} : vector<8x256xf32> to vector<8x64xf32>
    %394 = arith.negf %393 : vector<8x64xf32>
    %395 = math.exp %394 : vector<8x64xf32>
    %cst_103 = arith.constant 1.000000e+00 : f32
    %396 = vector.broadcast %cst_103 : f32 to vector<8x64xf32>
    %397 = arith.addf %396, %395 : vector<8x64xf32>
    %398 = arith.divf %396, %397 : vector<8x64xf32>
    %399 = vector.extract_strided_slice %386 {offsets = [0, 128], sizes = [8, 64], strides = [1, 1]} : vector<8x256xf32> to vector<8x64xf32>
    %400 = math.tanh %399 : vector<8x64xf32>
    %401 = vector.extract_strided_slice %386 {offsets = [0, 192], sizes = [8, 64], strides = [1, 1]} : vector<8x256xf32> to vector<8x64xf32>
    %402 = arith.negf %401 : vector<8x64xf32>
    %403 = math.exp %402 : vector<8x64xf32>
    %cst_104 = arith.constant 1.000000e+00 : f32
    %404 = vector.broadcast %cst_104 : f32 to vector<8x64xf32>
    %405 = arith.addf %404, %403 : vector<8x64xf32>
    %406 = arith.divf %404, %405 : vector<8x64xf32>
    %407 = arith.mulf %398, %349 : vector<8x64xf32>
    %408 = arith.mulf %392, %400 : vector<8x64xf32>
    %409 = arith.addf %407, %408 : vector<8x64xf32>
    %410 = math.tanh %409 : vector<8x64xf32>
    %411 = arith.mulf %406, %410 : vector<8x64xf32>
    %412 = tpu.concatenate %411, %380 in 1 : vector<8x64xf32>, vector<8x64xf32> -> vector<8x128xf32>
    %c64_105 = arith.constant 64 : index
    %c0_106 = arith.constant 0 : index
    %413 = vector.load %arg2[%c64_105, %c0_106] : memref<256x256xf32, #tpu.memory_space<vmem>>, vector<128x256xf32>
    %cst_107 = arith.constant dense<0.000000e+00> : vector<8x256xf32>
    %414 = tpu.matmul %412, %413, %cst_107 {dimension_numbers = #tpu.dot_dimension_numbers<[1], [0], [0], [1], [0, 0, 1, 1], [], []>} : vector<8x128xf32>, vector<128x256xf32>, vector<8x256xf32> -> vector<8x256xf32>
    %415 = arith.addf %7, %414 : vector<8x256xf32>
    %416 = vector.extract_strided_slice %415 {offsets = [0, 0], sizes = [8, 64], strides = [1, 1]} : vector<8x256xf32> to vector<8x64xf32>
    %417 = arith.negf %416 : vector<8x64xf32>
    %418 = math.exp %417 : vector<8x64xf32>
    %cst_108 = arith.constant 1.000000e+00 : f32
    %419 = vector.broadcast %cst_108 : f32 to vector<8x64xf32>
    %420 = arith.addf %419, %418 : vector<8x64xf32>
    %421 = arith.divf %419, %420 : vector<8x64xf32>
    %422 = vector.extract_strided_slice %415 {offsets = [0, 64], sizes = [8, 64], strides = [1, 1]} : vector<8x256xf32> to vector<8x64xf32>
    %423 = arith.negf %422 : vector<8x64xf32>
    %424 = math.exp %423 : vector<8x64xf32>
    %cst_109 = arith.constant 1.000000e+00 : f32
    %425 = vector.broadcast %cst_109 : f32 to vector<8x64xf32>
    %426 = arith.addf %425, %424 : vector<8x64xf32>
    %427 = arith.divf %425, %426 : vector<8x64xf32>
    %428 = vector.extract_strided_slice %415 {offsets = [0, 128], sizes = [8, 64], strides = [1, 1]} : vector<8x256xf32> to vector<8x64xf32>
    %429 = math.tanh %428 : vector<8x64xf32>
    %430 = vector.extract_strided_slice %415 {offsets = [0, 192], sizes = [8, 64], strides = [1, 1]} : vector<8x256xf32> to vector<8x64xf32>
    %431 = arith.negf %430 : vector<8x64xf32>
    %432 = math.exp %431 : vector<8x64xf32>
    %cst_110 = arith.constant 1.000000e+00 : f32
    %433 = vector.broadcast %cst_110 : f32 to vector<8x64xf32>
    %434 = arith.addf %433, %432 : vector<8x64xf32>
    %435 = arith.divf %433, %434 : vector<8x64xf32>
    %436 = arith.mulf %427, %378 : vector<8x64xf32>
    %437 = arith.mulf %421, %429 : vector<8x64xf32>
    %438 = arith.addf %436, %437 : vector<8x64xf32>
    %439 = math.tanh %438 : vector<8x64xf32>
    %440 = arith.mulf %435, %439 : vector<8x64xf32>
    %c7_i32 = arith.constant 7 : i32
    %441 = arith.index_cast %c7_i32 : i32 to index
    %c0_111 = arith.constant 0 : index
    %c0_112 = arith.constant 0 : index
    %442 = vector.load %arg5[%441, %c0_111, %c0_112] : memref<8x8x256xf32, #tpu.memory_space<vmem>>, vector<1x8x256xf32>
    %443 = vector.shape_cast %442 : vector<1x8x256xf32> to vector<8x256xf32>
    %c0_113 = arith.constant 0 : index
    %c0_114 = arith.constant 0 : index
    %444 = vector.load %arg2[%c0_113, %c0_114] : memref<256x256xf32, #tpu.memory_space<vmem>>, vector<64x256xf32>
    %cst_115 = arith.constant dense<0.000000e+00> : vector<8x256xf32>
    %445 = tpu.matmul %411, %444, %cst_115 {dimension_numbers = #tpu.dot_dimension_numbers<[1], [0], [0], [1], [0, 0, 1, 1], [], []>} : vector<8x64xf32>, vector<64x256xf32>, vector<8x256xf32> -> vector<8x256xf32>
    %446 = arith.addf %443, %445 : vector<8x256xf32>
    %447 = vector.extract_strided_slice %446 {offsets = [0, 0], sizes = [8, 64], strides = [1, 1]} : vector<8x256xf32> to vector<8x64xf32>
    %448 = arith.negf %447 : vector<8x64xf32>
    %449 = math.exp %448 : vector<8x64xf32>
    %cst_116 = arith.constant 1.000000e+00 : f32
    %450 = vector.broadcast %cst_116 : f32 to vector<8x64xf32>
    %451 = arith.addf %450, %449 : vector<8x64xf32>
    %452 = arith.divf %450, %451 : vector<8x64xf32>
    %453 = vector.extract_strided_slice %446 {offsets = [0, 64], sizes = [8, 64], strides = [1, 1]} : vector<8x256xf32> to vector<8x64xf32>
    %454 = arith.negf %453 : vector<8x64xf32>
    %455 = math.exp %454 : vector<8x64xf32>
    %cst_117 = arith.constant 1.000000e+00 : f32
    %456 = vector.broadcast %cst_117 : f32 to vector<8x64xf32>
    %457 = arith.addf %456, %455 : vector<8x64xf32>
    %458 = arith.divf %456, %457 : vector<8x64xf32>
    %459 = vector.extract_strided_slice %446 {offsets = [0, 128], sizes = [8, 64], strides = [1, 1]} : vector<8x256xf32> to vector<8x64xf32>
    %460 = math.tanh %459 : vector<8x64xf32>
    %461 = vector.extract_strided_slice %446 {offsets = [0, 192], sizes = [8, 64], strides = [1, 1]} : vector<8x256xf32> to vector<8x64xf32>
    %462 = arith.negf %461 : vector<8x64xf32>
    %463 = math.exp %462 : vector<8x64xf32>
    %cst_118 = arith.constant 1.000000e+00 : f32
    %464 = vector.broadcast %cst_118 : f32 to vector<8x64xf32>
    %465 = arith.addf %464, %463 : vector<8x64xf32>
    %466 = arith.divf %464, %465 : vector<8x64xf32>
    %467 = arith.mulf %458, %409 : vector<8x64xf32>
    %468 = arith.mulf %452, %460 : vector<8x64xf32>
    %469 = arith.addf %467, %468 : vector<8x64xf32>
    %470 = math.tanh %469 : vector<8x64xf32>
    %471 = arith.mulf %466, %470 : vector<8x64xf32>
    %472 = tpu.concatenate %471, %440 in 1 : vector<8x64xf32>, vector<8x64xf32> -> vector<8x128xf32>
    %c64_119 = arith.constant 64 : index
    %c0_120 = arith.constant 0 : index
    %473 = vector.load %arg2[%c64_119, %c0_120] : memref<256x256xf32, #tpu.memory_space<vmem>>, vector<128x256xf32>
    %cst_121 = arith.constant dense<0.000000e+00> : vector<8x256xf32>
    %474 = tpu.matmul %472, %473, %cst_121 {dimension_numbers = #tpu.dot_dimension_numbers<[1], [0], [0], [1], [0, 0, 1, 1], [], []>} : vector<8x128xf32>, vector<128x256xf32>, vector<8x256xf32> -> vector<8x256xf32>
    %475 = arith.addf %7, %474 : vector<8x256xf32>
    %476 = vector.extract_strided_slice %475 {offsets = [0, 0], sizes = [8, 64], strides = [1, 1]} : vector<8x256xf32> to vector<8x64xf32>
    %477 = arith.negf %476 : vector<8x64xf32>
    %478 = math.exp %477 : vector<8x64xf32>
    %cst_122 = arith.constant 1.000000e+00 : f32
    %479 = vector.broadcast %cst_122 : f32 to vector<8x64xf32>
    %480 = arith.addf %479, %478 : vector<8x64xf32>
    %481 = arith.divf %479, %480 : vector<8x64xf32>
    %482 = vector.extract_strided_slice %475 {offsets = [0, 64], sizes = [8, 64], strides = [1, 1]} : vector<8x256xf32> to vector<8x64xf32>
    %483 = arith.negf %482 : vector<8x64xf32>
    %484 = math.exp %483 : vector<8x64xf32>
    %cst_123 = arith.constant 1.000000e+00 : f32
    %485 = vector.broadcast %cst_123 : f32 to vector<8x64xf32>
    %486 = arith.addf %485, %484 : vector<8x64xf32>
    %487 = arith.divf %485, %486 : vector<8x64xf32>
    %488 = vector.extract_strided_slice %475 {offsets = [0, 128], sizes = [8, 64], strides = [1, 1]} : vector<8x256xf32> to vector<8x64xf32>
    %489 = math.tanh %488 : vector<8x64xf32>
    %490 = vector.extract_strided_slice %475 {offsets = [0, 192], sizes = [8, 64], strides = [1, 1]} : vector<8x256xf32> to vector<8x64xf32>
    %491 = arith.negf %490 : vector<8x64xf32>
    %492 = math.exp %491 : vector<8x64xf32>
    %cst_124 = arith.constant 1.000000e+00 : f32
    %493 = vector.broadcast %cst_124 : f32 to vector<8x64xf32>
    %494 = arith.addf %493, %492 : vector<8x64xf32>
    %495 = arith.divf %493, %494 : vector<8x64xf32>
    %496 = arith.mulf %487, %438 : vector<8x64xf32>
    %497 = arith.mulf %481, %489 : vector<8x64xf32>
    %498 = arith.addf %496, %497 : vector<8x64xf32>
    %499 = math.tanh %498 : vector<8x64xf32>
    %500 = arith.mulf %495, %499 : vector<8x64xf32>
    %c8_i32 = arith.constant 8 : i32
    %c192 = arith.constant 192 : index
    %c0_125 = arith.constant 0 : index
    %501 = vector.load %arg2[%c192, %c0_125] : memref<256x256xf32, #tpu.memory_space<vmem>>, vector<64x128xf32>
    %cst_126 = arith.constant dense<0.000000e+00> : vector<8x128xf32>
    %502 = tpu.matmul %500, %501, %cst_126 {dimension_numbers = #tpu.dot_dimension_numbers<[1], [0], [0], [1], [0, 0, 1, 1], [], []>} : vector<8x64xf32>, vector<64x128xf32>, vector<8x128xf32> -> vector<8x128xf32>
    %503 = vector.broadcast %10 : vector<1x128xf32> to vector<8x128xf32>
    %504 = arith.addf %502, %503 : vector<8x128xf32>
    %c0_127 = arith.constant 0 : index
    %c0_128 = arith.constant 0 : index
    %505 = vector.load %arg4[%c0_127, %c0_128] : memref<8x128xf32, #tpu.memory_space<vmem>>, vector<8x128xf32>
    tpu.vector_store %arg4[%c0_127, %c0_128], %504 {strides = array<i32>} : memref<8x128xf32, #tpu.memory_space<vmem>>, vector<8x128xf32>,
    return
  }
  func.func @transform_0(%arg0: i32) -> (i32, i32, i32) {
    %c0_i32 = arith.constant 0 : i32
    %c0_i32_0 = arith.constant 0 : i32
    %c0_i32_1 = arith.constant 0 : i32
    %c0_i32_2 = arith.constant 0 : i32
    return %c0_i32, %c0_i32_0, %c0_i32_1 : i32, i32, i32
  }
  func.func @transform_1(%arg0: i32) -> (i32, i32) {
    %c0_i32 = arith.constant 0 : i32
    %c0_i32_0 = arith.constant 0 : i32
    %c0_i32_1 = arith.constant 0 : i32
    return %c0_i32, %c0_i32_0 : i32, i32
  }
  func.func @transform_2(%arg0: i32) -> (i32, i32, i32) {
    %c0_i32 = arith.constant 0 : i32
    %c0_i32_0 = arith.constant 0 : i32
    %c0_i32_1 = arith.constant 0 : i32
    %c0_i32_2 = arith.constant 0 : i32
    return %c0_i32, %c0_i32_0, %c0_i32_1 : i32, i32, i32
  }
  func.func @transform_3(%arg0: i32) -> (i32, i32) {
    %c0_i32 = arith.constant 0 : i32
    %c0_i32_0 = arith.constant 0 : i32
    %c0_i32_1 = arith.constant 0 : i32
    return %c0_i32, %c0_i32_0 : i32, i32
  }
}

</mosaic_0001>

<bundles_post_ra>
// kernel: lstm_model_forward.1
= control target key start
LH: loop header
LB: loop body
LE: loop exit
PB: predicated region body
PF: predicated region fallthrough
CT: control target
= control target key end

     0   :  { %8 = vsyncpa [#allocation4], 0  ;;  %s2251_s12 = smov [#allocation3]   ;;  %s3098_s0 = inlined_call_operand.vmem [shape: f32[8,8,1], index: 0, kind: input, shape index: {}]   ;;  %s3099_s1 = inlined_call_operand.hbm [shape: f32[256,256], index: 1, kind: input, shape index: {}]   ;;  %s3100_s2 = inlined_call_operand.vmem [shape: f32[4,1,256], index: 2, kind: input, shape index: {}]   ;;  %s3101_s3 = inlined_call_operand.vmem [shape: f32[8,128], index: 3, kind: output, shape index: {}]  }
   0x1   :  { %s16_s13 = sshll.u32 %s2251_s12, 4  ;;  %s17_s13 = int_to_ptr.vmem [resolvable:$true] %s16_s13 }
   0x2   :  { %s2237_s14 = scalar_lea.vmem %s17_s13, 8192  ;;  %p2242_p1 = scmp.lt.s32.totalorder %s17_s13, %s17_s13 }
   0x3   :  { %p2238_p0 = scmp.ne.s32.totalorder %s17_s13, %s2237_s14  ;;  %p2243_p2 = scmp.lt.s32.totalorder %s2237_s14, %s2237_s14 }
   0x5   :  { %p2244_p3 = por %p2243_p2, %p2242_p1 }
   0x7   :  { %p2245_p4 = pnand %p2244_p3, %p2238_p0 }
   0x9   :  { %2248 = shalt.err (!%p2245_p4)
}
   0xa   :  { %s2252_s15 = smov 256   ;;  %s2253_s16 = smov 16  }
   0xb   :  { %22 = dma.hbm_to_vmem [thread:$0]  %s3099_s1, 8192, %s17_s13, [#allocation4], %s2252_s15, %s2252_s15, %s2253_s16  }
   0xc   :  { %2249 = dma.done.wait [#allocation4], 8192  }
   0xd   :  { %2250 = vsyncadd [#allocation4], 4294959104  ;;  %v3102_v0 = vmov 0.0   ;;  %v2255_v1 = vmov 0   ;;  %v2283_v2 = vld [vmem:[#allocation3 + $0x78] sm:$0xff]  ;;  %v2285_v3 = vld [vmem:[#allocation3 + $0x70] sm:$0xff]  ;;  %v34_v19 = vlaneseq }
   0xe   :  { %250 = vmatprep.mubr.f32.mxu0 %v3102_v0  ;;  %1987 = vset.pattern.permute.xlu0 %v2255_v1  ;;  %3150 = vst [vmem:[#allocation6_spill] sm:$0xff] %v2283_v2  ;;  %v2287_v4 = vld [vmem:[#allocation3 + $0x68] sm:$0xff]  ;;  %v2290_v5 = vld [vmem:[#allocation3 + $0x60] sm:$0xff]  ;;  %v2293_v6 = vld [vmem:[#allocation3 + $0x58] sm:$0xff]  ;;  %s2256_s24 = smov 64   ;;  %vm182_vm0 = vcmask 523264  }
   0xf   :  { %382 = vmatprep.mubr.f32.mxu1 %v3102_v0  ;;  %1988 = vset.pattern.permute.xlu1 %v2255_v1  ;;  %v2296_v7 = vld [vmem:[#allocation3 + $0x50] sm:$0xff]  ;;  %v2299_v8 = vld [vmem:[#allocation3 + $0x48] sm:$0xff]  ;;  %v2302_v9 = vld [vmem:[#allocation3 + $0x40] sm:$0xff]  ;;  %v35_v20 = vshrl.u32 %v34_v19, 7  ;;  %vm2257_vm1 = vmmov 0  }
  0x10   :  { %202 = vmatprep.subr.mxu0 %v2283_v2  ;;  %v46_v10 = vld [vmem:[%s3098_s0] sm:$0xff]  ;;  %v2308_v11 = vld [vmem:[#allocation3 + $0x38] sm:$0xff]  ;;  %v2311_v12 = vld [vmem:[#allocation3 + $0x30] sm:$0xff] }
  0x11   :  { %203 = vmatpush1.msra.mxu0 %v2285_v3  ;;  %56 = vperm.xlu0 %1987, %v46_v10   ;;  %v2314_v13 = vld [vmem:[#allocation3 + $0x28] sm:$0xff]  ;;  %v2317_v14 = vld [vmem:[#allocation3 + $0x20] sm:$0xff]  ;;  %v2320_v15 = vld [vmem:[#allocation3 + $0x18] sm:$0xff]  ;;  %v2352_v21 = vsub.s32 0, %v35_v20  ;;  %v2368_v31 = vsub.s32 1, %v35_v20 }
  0x12   :  { %204 = vmatprep.subr.mxu0 %v2287_v4  ;;  %3151 = vst [vmem:[#allocation7_spill] sm:$0xff] %v2317_v14  ;;  %3152 = vst [vmem:[#allocation8_spill] sm:$0xff] %v2320_v15  ;;  %v2323_v16 = vld [vmem:[#allocation3 + $0x10] sm:$0xff]  ;;  %v2326_v17 = vld [vmem:[#allocation3 + $0x8] sm:$0xff] }
  0x13   :  { %205 = vmatpush1.msra.mxu0 %v2290_v5  ;;  %3153 = vst [vmem:[#allocation9_spill] sm:$0xff] %v2323_v16  ;;  %3154 = vst [vmem:[#allocation10_spill] sm:$0xff] %v2326_v17  ;;  %v2329_v18 = vld [vmem:[#allocation3] sm:$0xff]  ;;  %v2385_v44 = vld [vmem:[#allocation3 + $0x178] sm:$0xff] }
  0x14   :  { %206 = vmatprep.subr.mxu0 %v2293_v6  ;;  %3155 = vst [vmem:[#allocation11_spill] sm:$0xff] %v2329_v18  ;;  %3156 = vst [vmem:[#allocation12_spill] sm:$0xff] %v2352_v21  ;;  %v28_v22 = vld [vmem:[%s3100_s2] sm:$0x3]  ;;  %v1908_v25 = vld [vmem:[%s3100_s2 + $0x2] sm:$0x3]  ;;  %318 = vmatprep.subr.mxu1 %v2385_v44 }
  0x15   :  { %207 = vmatpush1.msra.mxu0 %v2296_v7  ;;  %v2358_v23 = vrot.slane %v28_v22, %v2352_v21  ;;  %v2365_v27 = vrot.slane %v1908_v25, %v2352_v21  ;;  %3159 = vst [vmem:[#allocation15_spill] sm:$0xff] %v2368_v31  ;;  %v2371_v33 = vrot.slane %v28_v22, %v2368_v31  ;;  %3161 = vst [vmem:[#allocation17_spill] sm:$0xff] %v2385_v44  ;;  %v2387_v45 = vld [vmem:[#allocation3 + $0x170] sm:$0xff]  ;;  %v2389_v46 = vld [vmem:[#allocation3 + $0x168] sm:$0xff] }
  0x16   :  { %208 = vmatprep.subr.mxu0 %v2299_v8  ;;  %v2375_v35 = vrot.slane %v1908_v25, %v2368_v31  ;;  %v2392_v47 = vld [vmem:[#allocation3 + $0x160] sm:$0xff]  ;;  %319 = vmatpush1.msra.mxu1 %v2387_v45  ;;  %v2396_v48 = vld [vmem:[#allocation3 + $0x158] sm:$0xff]  ;;  %v2399_v49 = vld [vmem:[#allocation3 + $0x150] sm:$0xff] }
  0x17   :  { %209 = vmatpush1.msra.mxu0 %v2302_v9  ;;  %3157 = vst [vmem:[#allocation13_spill] sm:$0xff] %v2358_v23  ;;  %3158 = vst [vmem:[#allocation14_spill] sm:$0xff] %v2365_v27  ;;  %320 = vmatprep.subr.mxu1 %v2389_v46  ;;  %v2402_v50 = vld [vmem:[#allocation3 + $0x148] sm:$0xff]  ;;  %v2405_v51 = vld [vmem:[#allocation3 + $0x140] sm:$0xff] }
  0x18   :  { %210 = vmatprep.subr.mxu0 %v2308_v11  ;;  %3160 = vst [vmem:[#allocation16_spill] sm:$0xff] %v2375_v35  ;;  %321 = vmatpush1.msra.mxu1 %v2392_v47  ;;  %v2408_v52 = vld [vmem:[#allocation3 + $0x138] sm:$0xff]  ;;  %v2411_v53 = vld [vmem:[#allocation3 + $0x130] sm:$0xff]  ;;  %v2414_v54 = vld [vmem:[#allocation3 + $0x128] sm:$0xff] }
  0x19   :  { %211 = vmatpush1.msra.mxu0 %v2311_v12  ;;  %322 = vmatprep.subr.mxu1 %v2396_v48  ;;  %v2417_v55 = vld [vmem:[#allocation3 + $0x120] sm:$0xff]  ;;  %v2420_v56 = vld [vmem:[#allocation3 + $0x118] sm:$0xff]  ;;  %v2423_v57 = vld [vmem:[#allocation3 + $0x110] sm:$0xff] }
  0x1a   :  { %212 = vmatprep.subr.mxu0 %v2314_v13  ;;  %323 = vmatpush1.msra.mxu1 %v2399_v49  ;;  %v2426_v58 = vld [vmem:[#allocation3 + $0x108] sm:$0xff]  ;;  %v2429_v59 = vld [vmem:[#allocation3 + $0x100] sm:$0xff]  ;;  %v2432_v60 = vld [vmem:[#allocation3 + $0xf8] sm:$0xff] }
  0x1b   :  { %213 = vmatpush1.msra.mxu0 %v2317_v14  ;;  %324 = vmatprep.subr.mxu1 %v2402_v50  ;;  %v2435_v61 = vld [vmem:[#allocation3 + $0xf0] sm:$0xff]  ;;  %v2438_v62 = vld [vmem:[#allocation3 + $0xe8] sm:$0xff]  ;;  %v2441_v63 = vld [vmem:[#allocation3 + $0xe0] sm:$0xff] }
  0x1c   :  { %214 = vmatprep.subr.mxu0 %v2320_v15  ;;  %325 = vmatpush1.msra.mxu1 %v2405_v51  ;;  %v2444_v1 = vld [vmem:[#allocation3 + $0xd8] sm:$0xff]  ;;  %v2447_v10 = vld [vmem:[#allocation3 + $0xd0] sm:$0xff]  ;;  %v2450_v19 = vld [vmem:[#allocation3 + $0xc8] sm:$0xff] }
  0x1d   :  { %215 = vmatpush1.msra.mxu0 %v2323_v16  ;;  %326 = vmatprep.subr.mxu1 %v2408_v52  ;;  %v2453_v20 = vld [vmem:[#allocation3 + $0xc0] sm:$0xff]  ;;  %v2456_v22 = vld [vmem:[#allocation3 + $0xb8] sm:$0xff]  ;;  %v2462_v25 = vld [vmem:[#allocation3 + $0xa8] sm:$0xff] }
  0x1e   :  { %216 = vmatprep.subr.mxu0 %v2326_v17  ;;  %327 = vmatpush1.msra.mxu1 %v2411_v53  ;;  %3162 = vst [vmem:[#allocation18_spill] sm:$0xff] %v2462_v25 }
  0x1f   :  { %217 = vmatpush1.msra.mxu0 %v2329_v18  ;;  %328 = vmatprep.subr.mxu1 %v2414_v54 }
  0x20   :  { %251 = vmatmul.mubr.f32.vlgmr.msra.gmra.mxu0 %v3102_v0  ;;  %434 = vmatprep.subr.mxu0 %v2283_v2 }
  0x21   :  { %435 = vmatpush1.msra.mxu0 %v2285_v3  ;;  %482 = vmatprep.mubr.f32.mxu0 %v3102_v0 }
  0x22   :  { %436 = vmatprep.subr.mxu0 %v2287_v4  ;;  %329 = vmatpush1.msra.mxu1 %v2417_v55 }
  0x23   :  { %437 = vmatpush1.msra.mxu0 %v2290_v5  ;;  %330 = vmatprep.subr.mxu1 %v2420_v56 }
  0x24   :  { %438 = vmatprep.subr.mxu0 %v2293_v6  ;;  %331 = vmatpush1.msra.mxu1 %v2423_v57 }
  0x25   :  { %439 = vmatpush1.msra.mxu0 %v2296_v7  ;;  %332 = vmatprep.subr.mxu1 %v2426_v58 }
  0x26   :  { %440 = vmatprep.subr.mxu0 %v2299_v8  ;;  %333 = vmatpush1.msra.mxu1 %v2429_v59 }
  0x27   :  { %441 = vmatpush1.msra.mxu0 %v2302_v9  ;;  %334 = vmatprep.subr.mxu1 %v2432_v60 }
  0x28   :  { %442 = vmatprep.subr.mxu0 %v2308_v11  ;;  %335 = vmatpush1.msra.mxu1 %v2435_v61 }
  0x29   :  { %443 = vmatpush1.msra.mxu0 %v2311_v12  ;;  %336 = vmatprep.subr.mxu1 %v2438_v62 }
  0x2a   :  { %444 = vmatprep.subr.mxu0 %v2314_v13  ;;  %337 = vmatpush1.msra.mxu1 %v2441_v63 }
  0x2b   :  { %445 = vmatpush1.msra.mxu0 %v2317_v14  ;;  %338 = vmatprep.subr.mxu1 %v2444_v1 }
  0x2c   :  { %446 = vmatprep.subr.mxu0 %v2320_v15  ;;  %339 = vmatpush1.msra.mxu1 %v2447_v10 }
  0x2d   :  { %447 = vmatpush1.msra.mxu0 %v2323_v16  ;;  %340 = vmatprep.subr.mxu1 %v2450_v19 }
  0x2e   :  { %448 = vmatprep.subr.mxu0 %v2326_v17  ;;  %341 = vmatpush1.msra.mxu1 %v2453_v20 }
  0x2f   :  { %449 = vmatpush1.msra.mxu0 %v2329_v18  ;;  %342 = vmatprep.subr.mxu1 %v2456_v22 }
  0x30   :  { %518 = vmatprep.subr.mxu0 %v2385_v44 }
  0x8c   :  { %v57_v24 = vpop.permute.xlu0 %56 }
  0x8d   :  { %v105_v26 = vmul.f32 %v2358_v23, %v57_v24  ;;  %v106_v34 = vmul.f32 %v2371_v33, %v57_v24  ;;  %v2459_v24 = vld [vmem:[#allocation3 + $0xb0] sm:$0xff] }
  0x8e   :  { %343 = vmatpush1.msra.mxu1 %v2459_v24 }
  0x8f   :  { %v132_v28 = vadd.f32 %v2365_v27, %v105_v26  ;;  %v133_v37 = vadd.f32 %v2375_v35, %v106_v34  ;;  %v2465_v26 = vld [vmem:[#allocation3 + $0xa0] sm:$0xff]  ;;  %344 = vmatprep.subr.mxu1 %v2462_v25 }
  0x90   :  { %3163 = vst [vmem:[#allocation19_spill] sm:$0xff] %v2465_v26  ;;  %345 = vmatpush1.msra.mxu1 %v2465_v26 }
  0xe0   :  { %v252_v29 = vpop.f32.mrf.mxu0 }
  0xe1   :  { %v257_v30 = vadd.f32 %v252_v29, %v132_v28  ;;  %v2468_v28 = vld [vmem:[#allocation3 + $0x98] sm:$0xff]  ;;  %v2471_v29 = vld [vmem:[#allocation3 + $0x90] sm:$0xff] }
  0xe2   :  { %v254_v36 = vpop.f32.mrf.mxu0  ;;  %3164 = vst [vmem:[#allocation20_spill] sm:$0xff] %v2468_v28  ;;  %3165 = vst [vmem:[#allocation21_spill] sm:$0xff] %v2471_v29  ;;  %346 = vmatprep.subr.mxu1 %v2468_v28 }
  0xe3   :  { %v1911_v32 = vmul.f32 -1.442695, %v257_v30  ;;  %v2378_v38 = vadd.f32 %v254_v36, %v133_v37  ;;  %v2474_v30 = vld [vmem:[#allocation3 + $0x88] sm:$0xff]  ;;  %347 = vmatpush1.msra.mxu1 %v2471_v29 }
  0xe4   :  { %3166 = vst [vmem:[#allocation22_spill] sm:$0xff] %v2474_v30  ;;  %348 = vmatprep.subr.mxu1 %v2474_v30 }
  0xe5   :  { %1989 = vpow2.f32 %v1911_v32  ;;  %v2477_v32 = vld [vmem:[#allocation3 + $0x80] sm:$0xff]  ;;  %v1912_v34 = vmul.f32 -1.442695, %v2378_v38 }
  0xe6   :  { %1991 = vtanh.f32 %v2378_v38  ;;  %3167 = vst [vmem:[#allocation23_spill] sm:$0xff] %v2477_v32  ;;  %349 = vmatpush1.msra.mxu1 %v2477_v32  ;;  %v47_v38 = vld [vmem:[%s3098_s0 + $0x8] sm:$0xff] }
  0xe7   :  { %634 = vmatprep.subr.mxu1 %v2283_v2 }
  0xf2   :  { %v1990_v39 = vpop.eup %1989 }
  0xf3   :  { %v262_v40 = vadd.f32 1.0, %v1990_v39  ;;  %v1992_v41 = vpop.eup %1991 }
  0xf5   :  { %1993 = vrcp.f32 %v262_v40 }
  0xf6   :  { %1995 = vpow2.f32 %v1912_v34 }
 0x102   :  { %v2381_v42 = vpop.eup %1993 }
 0x103   :  { %v273_v43 = vmul.f32 %v2381_v42, %v1992_v41  ;;  %v1996_v36 = vpop.eup %1995  ;;  %v272_v39 = vmul.f32 0.0, %v2381_v42 }
 0x104   :  { %v269_v37 = vadd.f32 1.0, %v1996_v36  ;;  %v1909_v36 = vld [vmem:[%s3100_s2 + $0x4] sm:$0x3] }
 0x105   :  { %275 = vrot.lane.b32.xlu0 %v273_v43, %s2256_s24 }
 0x106   :  { %1997 = vrcp.f32 %v269_v37  ;;  %v2549_v37 = vrot.slane %v1909_v36, %v2352_v21 }
 0x113   :  { %v1998_v43 = vpop.eup %1997 }
 0x177   :  { %v276_v40 = vpop.permute.xlu0 %275 }
 0x178   :  { %v2485_v41 = vadd.f32 %v276_v40, %v272_v39 }
 0x17a   :  { %1999 = vtanh.f32 %v2485_v41 }
 0x187   :  { %v2000_v0 = vpop.eup %1999 }
 0x188   :  { %v280_v31 = vmul.f32 %v2000_v0, %v1998_v43  ;;  %v3168_v0 = vmov 0.0  }
 0x18a   :  { %282 = vrot.lane.b32.xlu1 %v280_v31, %s2256_s24 }
 0x18e   :  { %61 = vperm.xlu1 %1988, %v47_v38  }
 0x1fc   :  { %v283_v34 = vpop.permute.xlu1 %282 }
 0x1fd   :  { %1913 = vmatmul.mubr.msk.f32.vlgmr.msra.gmra.mxu1 %vm182_vm0, %v283_v34  ;;  %1916 = vmatmul.mubr.msk.f32.vlgmr.msra.gmra.mxu0 %vm182_vm0, %v283_v34 }
 0x1fe   :  { %519 = vmatpush1.msra.mxu0 %v2387_v45  ;;  %635 = vmatpush1.msra.mxu1 %v2285_v3 }
 0x1ff   :  { %520 = vmatprep.subr.mxu0 %v2389_v46  ;;  %636 = vmatprep.subr.mxu1 %v2287_v4 }
 0x200   :  { %521 = vmatpush1.msra.mxu0 %v2392_v47  ;;  %637 = vmatpush1.msra.mxu1 %v2290_v5 }
 0x201   :  { %522 = vmatprep.subr.mxu0 %v2396_v48  ;;  %638 = vmatprep.subr.mxu1 %v2293_v6 }
 0x202   :  { %523 = vmatpush1.msra.mxu0 %v2399_v49  ;;  %639 = vmatpush1.msra.mxu1 %v2296_v7 }
 0x203   :  { %524 = vmatprep.subr.mxu0 %v2402_v50  ;;  %640 = vmatprep.subr.mxu1 %v2299_v8 }
 0x204   :  { %525 = vmatpush1.msra.mxu0 %v2405_v51  ;;  %641 = vmatpush1.msra.mxu1 %v2302_v9 }
 0x205   :  { %526 = vmatprep.subr.mxu0 %v2408_v52  ;;  %642 = vmatprep.subr.mxu1 %v2308_v11 }
 0x206   :  { %527 = vmatpush1.msra.mxu0 %v2411_v53  ;;  %643 = vmatpush1.msra.mxu1 %v2311_v12 }
 0x207   :  { %528 = vmatprep.subr.mxu0 %v2414_v54  ;;  %644 = vmatprep.subr.mxu1 %v2314_v13 }
 0x208   :  { %529 = vmatpush1.msra.mxu0 %v2417_v55  ;;  %645 = vmatpush1.msra.mxu1 %v2317_v14 }
 0x209   :  { %530 = vmatprep.subr.mxu0 %v2420_v56  ;;  %646 = vmatprep.subr.mxu1 %v2320_v15  ;;  %v62_v31 = vpop.permute.xlu1 %61 }
 0x20a   :  { %531 = vmatpush1.msra.mxu0 %v2423_v57  ;;  %647 = vmatpush1.msra.mxu1 %v2323_v16  ;;  %v107_v42 = vmul.f32 %v2358_v23, %v62_v31  ;;  %v108_v23 = vmul.f32 %v2371_v33, %v62_v31 }
 0x20b   :  { %532 = vmatprep.subr.mxu0 %v2426_v58  ;;  %648 = vmatprep.subr.mxu1 %v2326_v17 }
 0x20c   :  { %533 = vmatpush1.msra.mxu0 %v2429_v59  ;;  %649 = vmatpush1.msra.mxu1 %v2329_v18  ;;  %v134_v39 = vadd.f32 %v2365_v27, %v107_v42  ;;  %v3169_v42 = vld [vmem:[#allocation15_spill] sm:$0xff] }
 0x20d   :  { %534 = vmatprep.subr.mxu0 %v2432_v60  ;;  %682 = vmatprep.mubr.f32.mxu1 %v3168_v0  ;;  %v2556_v27 = vrot.slane %v1909_v36, %v3169_v42 }
 0x20e   :  { %535 = vmatpush1.msra.mxu0 %v2435_v61  ;;  %582 = vmatprep.mubr.f32.mxu0 %v3168_v0 }
 0x20f   :  { %536 = vmatprep.subr.mxu0 %v2438_v62  ;;  %718 = vmatprep.subr.mxu1 %v2385_v44 }
 0x210   :  { %537 = vmatpush1.msra.mxu0 %v2441_v63 }
 0x211   :  { %538 = vmatprep.subr.mxu0 %v2444_v1 }
 0x212   :  { %539 = vmatpush1.msra.mxu0 %v2447_v10 }
 0x213   :  { %540 = vmatprep.subr.mxu0 %v2450_v19 }
 0x214   :  { %541 = vmatpush1.msra.mxu0 %v2453_v20 }
 0x215   :  { %542 = vmatprep.subr.mxu0 %v2456_v22 }
 0x216   :  { %543 = vmatpush1.msra.mxu0 %v2459_v24 }
 0x217   :  { %544 = vmatprep.subr.mxu0 %v2462_v25 }
 0x218   :  { %545 = vmatpush1.msra.mxu0 %v2465_v26 }
 0x219   :  { %546 = vmatprep.subr.mxu0 %v2468_v28 }
 0x21a   :  { %547 = vmatpush1.msra.mxu0 %v2471_v29  ;;  %v135_v29 = vadd.f32 %v2375_v35, %v108_v23 }
 0x21b   :  { %548 = vmatprep.subr.mxu0 %v2474_v30 }
 0x21c   :  { %549 = vmatpush1.msra.mxu0 %v2477_v32 }
 0x21d   :  { %834 = vmatprep.subr.mxu0 %v2283_v2 }
 0x2bd   :  { %v384_v40 = vpop.f32.mrf.mxu1  ;;  %v484_v43 = vpop.f32.mrf.mxu0 }
 0x2be   :  { %v389_v38 = vadd.f32 %v384_v40, %v2549_v37  ;;  %v489_v34 = vadd.f32 %v484_v43, %v134_v39 }
 0x2bf   :  { %v486_v2 = vpop.f32.mrf.mxu0  ;;  %v386_v40 = vpop.f32.mrf.mxu1 }
 0x2c0   :  { %v1917_v32 = vmul.f32 -1.442695, %v489_v34  ;;  %v1914_v30 = vmul.f32 -1.442695, %v389_v38  ;;  %v490_v28 = vadd.f32 %v486_v2, %v135_v29  ;;  %v390_v43 = vadd.f32 %v386_v40, %v2556_v27  ;;  %v48_v2 = vld [vmem:[%s3098_s0 + $0x10] sm:$0xff] }
 0x2c2   :  { %2001 = vpow2.f32 %v1917_v32  ;;  %v1918_v29 = vmul.f32 -1.442695, %v490_v28 }
 0x2c3   :  { %2003 = vpow2.f32 %v1914_v30 }
 0x2c4   :  { %2005 = vtanh.f32 %v490_v28 }
 0x2cf   :  { %v2002_v26 = vpop.eup %2001 }
 0x2d0   :  { %v494_v21 = vadd.f32 1.0, %v2002_v26  ;;  %v2004_v25 = vpop.eup %2003 }
 0x2d1   :  { %v394_v39 = vadd.f32 1.0, %v2004_v25  ;;  %v2006_v30 = vpop.eup %2005  ;;  %v49_v25 = vld [vmem:[%s3098_s0 + $0x18] sm:$0xff] }
 0x2d2   :  { %2007 = vrcp.f32 %v494_v21 }
 0x2d3   :  { %2009 = vrcp.f32 %v394_v39 }
 0x2d4   :  { %2011 = vtanh.f32 %v390_v43 }
 0x2d5   :  { %2013 = vpow2.f32 %v1918_v29 }
 0x2df   :  { %v2008_v32 = vpop.eup %2007 }
 0x2e0   :  { %v505_v31 = vmul.f32 %v2008_v32, %v2006_v30  ;;  %v2010_v23 = vpop.eup %2009  ;;  %v504_v34 = vmul.f32 %v2008_v32, %v2485_v41 }
 0x2e1   :  { %v2012_v21 = vpop.eup %2011 }
 0x2e2   :  { %507 = vrot.lane.b32.xlu0 %v505_v31, %s2256_s24  ;;  %v405_v26 = vmul.f32 %v2012_v21, %v2010_v23  ;;  %v2014_v36 = vpop.eup %2013 }
 0x2e3   :  { %v501_v38 = vadd.f32 1.0, %v2014_v36 }
 0x2e5   :  { %2015 = vrcp.f32 %v501_v38 }
 0x2e6   :  { %66 = vperm.xlu0 %1987, %v48_v2   ;;  %v1915_v2 = vmul.f32 -1.442695, %v390_v43  ;;  %v3170_v43 = vld [vmem:[#allocation18_spill] sm:$0xff] }
 0x2ea   :  { %407 = vrot.lane.b32.xlu0 %v405_v26, %s2256_s24  ;;  %v404_v26 = vmul.f32 0.0, %v2010_v23  ;;  %v3171_v23 = vld [vmem:[#allocation19_spill] sm:$0xff] }
 0x2ee   :  { %71 = vperm.xlu0 %1987, %v49_v25  }
 0x2f2   :  { %v2016_v39 = vpop.eup %2015 }
 0x354   :  { %v508_v42 = vpop.permute.xlu0 %507 }
 0x355   :  { %v2568_v40 = vadd.f32 %v508_v42, %v504_v34 }
 0x357   :  { %2017 = vtanh.f32 %v2568_v40 }
 0x358   :  { %2019 = vpow2.f32 %v1915_v2  ;;  %v3175_v2 = vld [vmem:[#allocation23_spill] sm:$0xff] }
 0x361   :  { %v2572_v21 = vpop.permute.xlu0 %66 }
 0x364   :  { %v2018_v30 = vpop.eup %2017 }
 0x365   :  { %v512_v31 = vmul.f32 %v2018_v30, %v2016_v39  ;;  %v408_v28 = vpop.permute.xlu0 %407  ;;  %v2020_v25 = vpop.eup %2019  ;;  %v3172_v39 = vld [vmem:[#allocation20_spill] sm:$0xff]  ;;  %v3173_v30 = vld [vmem:[#allocation21_spill] sm:$0xff] }
 0x366   :  { %v2574_v29 = vadd.f32 %v408_v28, %v404_v26  ;;  %v401_v41 = vadd.f32 1.0, %v2020_v25  ;;  %v3176_v28 = vld [vmem:[#allocation6_spill] sm:$0xff]  ;;  %v3177_v26 = vld [vmem:[#allocation13_spill] sm:$0xff] }
 0x367   :  { %514 = vrot.lane.b32.xlu1 %v512_v31, %s2256_s24  ;;  %v3174_v31 = vld [vmem:[#allocation22_spill] sm:$0xff]  ;;  %v109_v25 = vmul.f32 %v3177_v26, %v2572_v21 }
 0x368   :  { %2021 = vtanh.f32 %v2574_v29 }
 0x369   :  { %2023 = vrcp.f32 %v401_v41  ;;  %v3178_v41 = vld [vmem:[#allocation14_spill] sm:$0xff] }
 0x375   :  { %v2022_v32 = vpop.eup %2021 }
 0x376   :  { %v2024_v36 = vpop.eup %2023 }
 0x377   :  { %v412_v38 = vmul.f32 %v2024_v36, %v2022_v32  ;;  %v136_v32 = vadd.f32 %v3178_v41, %v109_v25 }
 0x3d9   :  { %v515_v34 = vpop.permute.xlu1 %514 }
 0x3da   :  { %v517_v42 = vsel %vm182_vm0, %v515_v34, %v412_v38  ;;  %1921 = vmatmul.mubr.msk.f32.vlgmr.msra.gmra.mxu1 %vm182_vm0, %v515_v34 }
 0x3db   :  { %583 = vmatmul.mubr.f32.vlgmr.msra.gmra.mxu0 %v517_v42  ;;  %719 = vmatpush1.msra.mxu1 %v2387_v45  ;;  %v110_v42 = vmul.f32 %v2371_v33, %v2572_v21 }
 0x3dc   :  { %835 = vmatpush1.msra.mxu0 %v2285_v3  ;;  %720 = vmatprep.subr.mxu1 %v2389_v46 }
 0x3dd   :  { %836 = vmatprep.subr.mxu0 %v2287_v4  ;;  %721 = vmatpush1.msra.mxu1 %v2392_v47 }
 0x3de   :  { %837 = vmatpush1.msra.mxu0 %v2290_v5  ;;  %722 = vmatprep.subr.mxu1 %v2396_v48 }
 0x3df   :  { %838 = vmatprep.subr.mxu0 %v2293_v6  ;;  %723 = vmatpush1.msra.mxu1 %v2399_v49 }
 0x3e0   :  { %839 = vmatpush1.msra.mxu0 %v2296_v7  ;;  %724 = vmatprep.subr.mxu1 %v2402_v50 }
 0x3e1   :  { %840 = vmatprep.subr.mxu0 %v2299_v8  ;;  %725 = vmatpush1.msra.mxu1 %v2405_v51 }
 0x3e2   :  { %841 = vmatpush1.msra.mxu0 %v2302_v9  ;;  %726 = vmatprep.subr.mxu1 %v2408_v52 }
 0x3e3   :  { %842 = vmatprep.subr.mxu0 %v2308_v11  ;;  %882 = vmatprep.mubr.f32.mxu0 %v3168_v0 }
 0x3e4   :  { %843 = vmatpush1.msra.mxu0 %v2311_v12  ;;  %727 = vmatpush1.msra.mxu1 %v2411_v53 }
 0x3e5   :  { %844 = vmatprep.subr.mxu0 %v2314_v13  ;;  %728 = vmatprep.subr.mxu1 %v2414_v54 }
 0x3e6   :  { %845 = vmatpush1.msra.mxu0 %v2317_v14  ;;  %729 = vmatpush1.msra.mxu1 %v2417_v55 }
 0x3e7   :  { %846 = vmatprep.subr.mxu0 %v2320_v15  ;;  %730 = vmatprep.subr.mxu1 %v2420_v56 }
 0x3e8   :  { %847 = vmatpush1.msra.mxu0 %v2323_v16  ;;  %731 = vmatpush1.msra.mxu1 %v2423_v57 }
 0x3e9   :  { %848 = vmatprep.subr.mxu0 %v2326_v17  ;;  %732 = vmatprep.subr.mxu1 %v2426_v58 }
 0x3ea   :  { %849 = vmatpush1.msra.mxu0 %v2329_v18  ;;  %733 = vmatpush1.msra.mxu1 %v2429_v59  ;;  %v137_v18 = vadd.f32 %v2375_v35, %v110_v42 }
 0x3eb   :  { %734 = vmatprep.subr.mxu1 %v2432_v60  ;;  %782 = vmatprep.mubr.f32.mxu1 %v3168_v0 }
 0x3ec   :  { %735 = vmatpush1.msra.mxu1 %v2435_v61  ;;  %918 = vmatprep.subr.mxu0 %v2385_v44 }
 0x3ed   :  { %736 = vmatprep.subr.mxu1 %v2438_v62 }
 0x3ee   :  { %737 = vmatpush1.msra.mxu1 %v2441_v63 }
 0x3ef   :  { %738 = vmatprep.subr.mxu1 %v2444_v1 }
 0x3f0   :  { %739 = vmatpush1.msra.mxu1 %v2447_v10 }
 0x3f1   :  { %740 = vmatprep.subr.mxu1 %v2450_v19 }
 0x3f2   :  { %741 = vmatpush1.msra.mxu1 %v2453_v20 }
 0x3f3   :  { %742 = vmatprep.subr.mxu1 %v2456_v22 }
 0x3f4   :  { %743 = vmatpush1.msra.mxu1 %v2459_v24 }
 0x3f5   :  { %744 = vmatprep.subr.mxu1 %v3170_v43 }
 0x3f6   :  { %745 = vmatpush1.msra.mxu1 %v3171_v23 }
 0x3f7   :  { %746 = vmatprep.subr.mxu1 %v3172_v39 }
 0x3f8   :  { %747 = vmatpush1.msra.mxu1 %v3173_v30 }
 0x3f9   :  { %748 = vmatprep.subr.mxu1 %v3174_v31 }
 0x3fa   :  { %749 = vmatpush1.msra.mxu1 %v3175_v2 }
 0x3fb   :  { %1034 = vmatprep.subr.mxu1 %v3176_v28 }
 0x49a   :  { %v684_v36 = vpop.f32.mrf.mxu1 }
 0x49b   :  { %v689_v38 = vadd.f32 %v684_v36, %v136_v32  ;;  %v584_v25 = vpop.f32.mrf.mxu0 }
 0x49c   :  { %v686_v44 = vpop.f32.mrf.mxu1  ;;  %v589_v32 = vadd.f32 %v584_v25, %v2549_v37 }
 0x49d   :  { %v1922_v34 = vmul.f32 -1.442695, %v689_v38  ;;  %v690_v17 = vadd.f32 %v686_v44, %v137_v18 }
 0x49e   :  { %v1919_v38 = vmul.f32 -1.442695, %v589_v32 }
 0x49f   :  { %2025 = vpow2.f32 %v1922_v34  ;;  %v1923_v36 = vmul.f32 -1.442695, %v690_v17 }
 0x4a0   :  { %2027 = vtanh.f32 %v690_v17 }
 0x4ac   :  { %v2026_v16 = vpop.eup %2025 }
 0x4ad   :  { %v694_v15 = vadd.f32 1.0, %v2026_v16  ;;  %v2028_v14 = vpop.eup %2027  ;;  %v586_v16 = vpop.f32.mrf.mxu0 }
 0x4af   :  { %2029 = vrcp.f32 %v694_v15 }
 0x4b0   :  { %2031 = vpow2.f32 %v1923_v36 }
 0x4b1   :  { %2033 = vpow2.f32 %v1919_v38 }
 0x4bc   :  { %v2030_v28 = vpop.eup %2029 }
 0x4bd   :  { %v705_v26 = vmul.f32 %v2030_v28, %v2028_v14  ;;  %v2032_v21 = vpop.eup %2031  ;;  %v704_v18 = vmul.f32 %v2030_v28, %v2568_v40  ;;  %v590_v14 = vadd.f32 %v586_v16, %v2556_v27 }
 0x4be   :  { %v2034_v34 = vpop.eup %2033  ;;  %v701_v42 = vadd.f32 1.0, %v2032_v21 }
 0x4bf   :  { %707 = vrot.lane.b32.xlu1 %v705_v26, %s2256_s24  ;;  %v594_v15 = vadd.f32 1.0, %v2034_v34  ;;  %v1920_v28 = vmul.f32 -1.442695, %v590_v14 }
 0x4c0   :  { %2035 = vrcp.f32 %v701_v42 }
 0x4cd   :  { %v2036_v17 = vpop.eup %2035 }
 0x531   :  { %v708_v44 = vpop.permute.xlu1 %707 }
 0x532   :  { %v2638_v35 = vadd.f32 %v708_v44, %v704_v18 }
 0x534   :  { %2037 = vtanh.f32 %v2638_v35 }
 0x535   :  { %2039 = vrcp.f32 %v594_v15 }
 0x536   :  { %2041 = vtanh.f32 %v590_v14 }
 0x537   :  { %2043 = vpow2.f32 %v1920_v28  ;;  %v3187_v28 = vld [vmem:[#allocation16_spill] sm:$0xff] }
 0x541   :  { %v2038_v26 = vpop.eup %2037 }
 0x542   :  { %v712_v25 = vmul.f32 %v2038_v26, %v2036_v17  ;;  %v2040_v32 = vpop.eup %2039 }
 0x543   :  { %v2042_v36 = vpop.eup %2041  ;;  %v604_v42 = vmul.f32 %v2040_v32, %v2574_v29 }
 0x544   :  { %714 = vrot.lane.b32.xlu1 %v712_v25, %s2256_s24  ;;  %v605_v40 = vmul.f32 %v2042_v36, %v2040_v32  ;;  %v2044_v38 = vpop.eup %2043 }
 0x545   :  { %v601_v34 = vadd.f32 1.0, %v2044_v38 }
 0x547   :  { %2045 = vrcp.f32 %v601_v34 }
 0x548   :  { %607 = vrot.lane.b32.xlu1 %v605_v40, %s2256_s24 }
 0x554   :  { %v2046_v29 = vpop.eup %2045 }
 0x5b6   :  { %v715_v21 = vpop.permute.xlu1 %714 }
 0x5b7   :  { %1926 = vmatmul.mubr.msk.f32.vlgmr.msra.gmra.mxu0 %vm182_vm0, %v715_v21 }
 0x5b8   :  { %919 = vmatpush1.msra.mxu0 %v2387_v45  ;;  %982 = vmatprep.mubr.f32.mxu0 %v3168_v0 }
 0x5b9   :  { %920 = vmatprep.subr.mxu0 %v2389_v46 }
 0x5ba   :  { %v608_v18 = vpop.permute.xlu1 %607  ;;  %921 = vmatpush1.msra.mxu0 %v2392_v47 }
 0x5bb   :  { %v2650_v16 = vadd.f32 %v608_v18, %v604_v42  ;;  %922 = vmatprep.subr.mxu0 %v2396_v48 }
 0x5bc   :  { %923 = vmatpush1.msra.mxu0 %v2399_v49 }
 0x5bd   :  { %2047 = vtanh.f32 %v2650_v16  ;;  %924 = vmatprep.subr.mxu0 %v2402_v50 }
 0x5be   :  { %925 = vmatpush1.msra.mxu0 %v2405_v51 }
 0x5bf   :  { %926 = vmatprep.subr.mxu0 %v2408_v52 }
 0x5c0   :  { %927 = vmatpush1.msra.mxu0 %v2411_v53 }
 0x5c1   :  { %928 = vmatprep.subr.mxu0 %v2414_v54 }
 0x5c2   :  { %929 = vmatpush1.msra.mxu0 %v2417_v55 }
 0x5c3   :  { %930 = vmatprep.subr.mxu0 %v2420_v56 }
 0x5c4   :  { %931 = vmatpush1.msra.mxu0 %v2423_v57 }
 0x5c5   :  { %932 = vmatprep.subr.mxu0 %v2426_v58 }
 0x5c6   :  { %933 = vmatpush1.msra.mxu0 %v2429_v59 }
 0x5c7   :  { %934 = vmatprep.subr.mxu0 %v2432_v60 }
 0x5c8   :  { %935 = vmatpush1.msra.mxu0 %v2435_v61 }
 0x5c9   :  { %936 = vmatprep.subr.mxu0 %v2438_v62 }
 0x5ca   :  { %v2048_v44 = vpop.eup %2047  ;;  %937 = vmatpush1.msra.mxu0 %v2441_v63 }
 0x5cb   :  { %v612_v15 = vmul.f32 %v2048_v44, %v2046_v29  ;;  %938 = vmatprep.subr.mxu0 %v2444_v1 }
 0x5cc   :  { %939 = vmatpush1.msra.mxu0 %v2447_v10 }
 0x5cd   :  { %v717_v14 = vsel %vm182_vm0, %v715_v21, %v612_v15  ;;  %940 = vmatprep.subr.mxu0 %v2450_v19  ;;  %v50_v15 = vld [vmem:[%s3098_s0 + $0x20] sm:$0xff] }
 0x5ce   :  { %783 = vmatmul.mubr.f32.vlgmr.msra.gmra.mxu1 %v717_v14  ;;  %941 = vmatpush1.msra.mxu0 %v2453_v20 }
 0x5cf   :  { %1035 = vmatpush1.msra.mxu1 %v2285_v3  ;;  %1082 = vmatprep.mubr.f32.mxu1 %v3168_v0  ;;  %v3179_v3 = vld [vmem:[#allocation6_spill] sm:$0xff] }
 0x5d0   :  { %1036 = vmatprep.subr.mxu1 %v2287_v4  ;;  %942 = vmatprep.subr.mxu0 %v2456_v22  ;;  %v3180_v4 = vld [vmem:[#allocation7_spill] sm:$0xff] }
 0x5d1   :  { %1037 = vmatpush1.msra.mxu1 %v2290_v5  ;;  %943 = vmatpush1.msra.mxu0 %v2459_v24  ;;  %v3181_v5 = vld [vmem:[#allocation8_spill] sm:$0xff] }
 0x5d2   :  { %1038 = vmatprep.subr.mxu1 %v2293_v6  ;;  %944 = vmatprep.subr.mxu0 %v3170_v43  ;;  %v3182_v6 = vld [vmem:[#allocation9_spill] sm:$0xff] }
 0x5d3   :  { %1039 = vmatpush1.msra.mxu1 %v2296_v7  ;;  %945 = vmatpush1.msra.mxu0 %v3171_v23  ;;  %v3183_v7 = vld [vmem:[#allocation10_spill] sm:$0xff] }
 0x5d4   :  { %1040 = vmatprep.subr.mxu1 %v2299_v8  ;;  %946 = vmatprep.subr.mxu0 %v3172_v39  ;;  %v3184_v8 = vld [vmem:[#allocation11_spill] sm:$0xff] }
 0x5d5   :  { %1041 = vmatpush1.msra.mxu1 %v2302_v9  ;;  %947 = vmatpush1.msra.mxu0 %v3173_v30  ;;  %v3185_v9 = vld [vmem:[#allocation17_spill] sm:$0xff] }
 0x5d6   :  { %1042 = vmatprep.subr.mxu1 %v2308_v11  ;;  %948 = vmatprep.subr.mxu0 %v3174_v31  ;;  %v72_v11 = vpop.permute.xlu0 %71 }
 0x5d7   :  { %1043 = vmatpush1.msra.mxu1 %v2311_v12  ;;  %949 = vmatpush1.msra.mxu0 %v3175_v2  ;;  %v3186_v12 = vld [vmem:[#allocation13_spill] sm:$0xff]  ;;  %v112_v36 = vmul.f32 %v2371_v33, %v72_v11 }
 0x5d8   :  { %1044 = vmatprep.subr.mxu1 %v2314_v13  ;;  %1234 = vmatprep.subr.mxu0 %v3179_v3  ;;  %v111_v17 = vmul.f32 %v3186_v12, %v72_v11 }
 0x5d9   :  { %1045 = vmatpush1.msra.mxu1 %v3180_v4  ;;  %v139_v38 = vadd.f32 %v3187_v28, %v112_v36 }
 0x5da   :  { %1046 = vmatprep.subr.mxu1 %v3181_v5  ;;  %v138_v26 = vadd.f32 %v3178_v41, %v111_v17 }
 0x5db   :  { %1047 = vmatpush1.msra.mxu1 %v3182_v6 }
 0x5dc   :  { %1048 = vmatprep.subr.mxu1 %v3183_v7 }
 0x5dd   :  { %1049 = vmatpush1.msra.mxu1 %v3184_v8 }
 0x5de   :  { %1118 = vmatprep.subr.mxu1 %v3185_v9 }
 0x677   :  { %v884_v13 = vpop.f32.mrf.mxu0 }
 0x678   :  { %v889_v25 = vadd.f32 %v884_v13, %v138_v26 }
 0x679   :  { %v886_v40 = vpop.f32.mrf.mxu0 }
 0x67a   :  { %v1927_v32 = vmul.f32 -1.442695, %v889_v25  ;;  %v890_v21 = vadd.f32 %v886_v40, %v139_v38 }
 0x67c   :  { %2049 = vpow2.f32 %v1927_v32  ;;  %v1928_v4 = vmul.f32 -1.442695, %v890_v21 }
 0x67d   :  { %2051 = vtanh.f32 %v890_v21 }
 0x689   :  { %v2050_v34 = vpop.eup %2049 }
 0x68a   :  { %v894_v42 = vadd.f32 1.0, %v2050_v34  ;;  %v2052_v18 = vpop.eup %2051 }
 0x68c   :  { %2053 = vrcp.f32 %v894_v42 }
 0x68d   :  { %2055 = vpow2.f32 %v1928_v4 }
 0x68e   :  { %v784_v14 = vpop.f32.mrf.mxu1 }
 0x68f   :  { %v789_v3 = vadd.f32 %v784_v14, %v2549_v37 }
 0x690   :  { %v786_v17 = vpop.f32.mrf.mxu1 }
 0x691   :  { %v1924_v5 = vmul.f32 -1.442695, %v789_v3  ;;  %v790_v32 = vadd.f32 %v786_v17, %v2556_v27 }
 0x693   :  { %2057 = vpow2.f32 %v1924_v5  ;;  %v1925_v42 = vmul.f32 -1.442695, %v790_v32 }
 0x699   :  { %v2054_v29 = vpop.eup %2053 }
 0x69a   :  { %v905_v44 = vmul.f32 %v2054_v29, %v2052_v18  ;;  %v2056_v6 = vpop.eup %2055  ;;  %v904_v11 = vmul.f32 %v2054_v29, %v2638_v35 }
 0x69b   :  { %v901_v8 = vadd.f32 1.0, %v2056_v6 }
 0x69c   :  { %907 = vrot.lane.b32.xlu0 %v905_v44, %s2256_s24 }
 0x69d   :  { %2059 = vrcp.f32 %v901_v8 }
 0x6a0   :  { %76 = vperm.xlu0 %1987, %v50_v15   ;;  %v2058_v7 = vpop.eup %2057 }
 0x6a1   :  { %v794_v13 = vadd.f32 1.0, %v2058_v7 }
 0x6aa   :  { %v2060_v36 = vpop.eup %2059 }
 0x70e   :  { %v908_v26 = vpop.permute.xlu0 %907 }
 0x70f   :  { %v2710_v25 = vadd.f32 %v908_v26, %v904_v11 }
 0x711   :  { %2061 = vtanh.f32 %v2710_v25 }
 0x712   :  { %2063 = vrcp.f32 %v794_v13 }
 0x713   :  { %2065 = vtanh.f32 %v790_v32 }
 0x714   :  { %2067 = vpow2.f32 %v1925_v42 }
 0x71e   :  { %v2062_v40 = vpop.eup %2061 }
 0x71f   :  { %v912_v38 = vmul.f32 %v2062_v40, %v2060_v36  ;;  %v2064_v21 = vpop.eup %2063 }
 0x720   :  { %v2066_v34 = vpop.eup %2065  ;;  %v804_v15 = vmul.f32 %v2064_v21, %v2650_v16 }
 0x721   :  { %914 = vrot.lane.b32.xlu1 %v912_v38, %s2256_s24  ;;  %v805_v35 = vmul.f32 %v2066_v34, %v2064_v21  ;;  %v2068_v18 = vpop.eup %2067 }
 0x722   :  { %v801_v44 = vadd.f32 1.0, %v2068_v18 }
 0x724   :  { %2069 = vrcp.f32 %v801_v44 }
 0x725   :  { %807 = vrot.lane.b32.xlu1 %v805_v35, %s2256_s24 }
 0x793   :  { %v915_v29 = vpop.permute.xlu1 %914 }
 0x794   :  { %1931 = vmatmul.mubr.msk.f32.vlgmr.msra.gmra.mxu1 %vm182_vm0, %v915_v29 }
 0x795   :  { %1119 = vmatpush1.msra.mxu1 %v2387_v45  ;;  %1182 = vmatprep.mubr.f32.mxu1 %v3168_v0  ;;  %v2070_v45 = vpop.eup %2069 }
 0x796   :  { %1120 = vmatprep.subr.mxu1 %v2389_v46 }
 0x797   :  { %v808_v14 = vpop.permute.xlu1 %807  ;;  %1121 = vmatpush1.msra.mxu1 %v2392_v47 }
 0x798   :  { %v2722_v3 = vadd.f32 %v808_v14, %v804_v15  ;;  %1122 = vmatprep.subr.mxu1 %v2396_v48  ;;  %v51_v14 = vld [vmem:[%s3098_s0 + $0x28] sm:$0xff] }
 0x799   :  { %1123 = vmatpush1.msra.mxu1 %v2399_v49  ;;  %v2746_v49 = vld [vmem:[#allocation3 + $0x70] sm:$0xff] }
 0x79a   :  { %2071 = vtanh.f32 %v2722_v3  ;;  %1124 = vmatprep.subr.mxu1 %v2402_v50  ;;  %v2750_v50 = vld [vmem:[#allocation3 + $0x68] sm:$0xff] }
 0x79b   :  { %1125 = vmatpush1.msra.mxu1 %v2405_v51  ;;  %v2754_v51 = vld [vmem:[#allocation3 + $0x60] sm:$0xff] }
 0x79c   :  { %1126 = vmatprep.subr.mxu1 %v2408_v52  ;;  %v2758_v52 = vld [vmem:[#allocation3 + $0x58] sm:$0xff] }
 0x79d   :  { %1127 = vmatpush1.msra.mxu1 %v2411_v53  ;;  %v2762_v53 = vld [vmem:[#allocation3 + $0x50] sm:$0xff] }
 0x79e   :  { %1128 = vmatprep.subr.mxu1 %v2414_v54  ;;  %v2766_v54 = vld [vmem:[#allocation3 + $0x48] sm:$0xff] }
 0x79f   :  { %1129 = vmatpush1.msra.mxu1 %v2417_v55  ;;  %v2770_v55 = vld [vmem:[#allocation3 + $0x40] sm:$0xff] }
 0x7a0   :  { %1130 = vmatprep.subr.mxu1 %v2420_v56  ;;  %v2774_v56 = vld [vmem:[#allocation3 + $0x38] sm:$0xff] }
 0x7a1   :  { %1131 = vmatpush1.msra.mxu1 %v2423_v57  ;;  %v2778_v57 = vld [vmem:[#allocation3 + $0x30] sm:$0xff] }
 0x7a2   :  { %1132 = vmatprep.subr.mxu1 %v2426_v58  ;;  %v2782_v58 = vld [vmem:[#allocation3 + $0x28] sm:$0xff] }
 0x7a3   :  { %1133 = vmatpush1.msra.mxu1 %v2429_v59  ;;  %v2785_v59 = vld [vmem:[#allocation3 + $0x78] sm:$0xff] }
 0x7a4   :  { %1134 = vmatprep.subr.mxu1 %v2432_v60  ;;  %v2788_v60 = vld [vmem:[#allocation3 + $0x20] sm:$0xff] }
 0x7a5   :  { %1135 = vmatpush1.msra.mxu1 %v2435_v61  ;;  %v2791_v61 = vld [vmem:[#allocation3 + $0x18] sm:$0xff] }
 0x7a6   :  { %1136 = vmatprep.subr.mxu1 %v2438_v62  ;;  %v2794_v62 = vld [vmem:[#allocation3 + $0x10] sm:$0xff] }
 0x7a7   :  { %v2072_v46 = vpop.eup %2071  ;;  %1137 = vmatpush1.msra.mxu1 %v2441_v63  ;;  %v2797_v63 = vld [vmem:[#allocation3 + $0x8] sm:$0xff] }
 0x7a8   :  { %v812_v47 = vmul.f32 %v2072_v46, %v2070_v45  ;;  %1138 = vmatprep.subr.mxu1 %v2444_v1  ;;  %v2800_v1 = vld [vmem:[#allocation3] sm:$0xff] }
 0x7a9   :  { %1139 = vmatpush1.msra.mxu1 %v2447_v10  ;;  %v77_v10 = vpop.permute.xlu0 %76 }
 0x7aa   :  { %v917_v48 = vsel %vm182_vm0, %v915_v29, %v812_v47  ;;  %1140 = vmatprep.subr.mxu1 %v2450_v19  ;;  %v113_v19 = vmul.f32 %v3186_v12, %v77_v10 }
 0x7ab   :  { %983 = vmatmul.mubr.f32.vlgmr.msra.gmra.mxu0 %v917_v48  ;;  %1141 = vmatpush1.msra.mxu1 %v2453_v20 }
 0x7ac   :  { %1235 = vmatpush1.msra.mxu0 %v2746_v49  ;;  %1142 = vmatprep.subr.mxu1 %v2456_v22  ;;  %v140_v20 = vadd.f32 %v3178_v41, %v113_v19 }
 0x7ad   :  { %1236 = vmatprep.subr.mxu0 %v2750_v50  ;;  %1143 = vmatpush1.msra.mxu1 %v2459_v24 }
 0x7ae   :  { %1237 = vmatpush1.msra.mxu0 %v2754_v51  ;;  %1144 = vmatprep.subr.mxu1 %v3170_v43 }
 0x7af   :  { %1238 = vmatprep.subr.mxu0 %v2758_v52  ;;  %1145 = vmatpush1.msra.mxu1 %v3171_v23  ;;  %v114_v23 = vmul.f32 %v2371_v33, %v77_v10 }
 0x7b0   :  { %1239 = vmatpush1.msra.mxu0 %v2762_v53  ;;  %1146 = vmatprep.subr.mxu1 %v3172_v39 }
 0x7b1   :  { %1240 = vmatprep.subr.mxu0 %v2766_v54  ;;  %1147 = vmatpush1.msra.mxu1 %v3173_v30  ;;  %v141_v30 = vadd.f32 %v3187_v28, %v114_v23  ;;  %v2826_v23 = vld [vmem:[#allocation3 + $0x170] sm:$0xff] }
 0x7b2   :  { %1241 = vmatpush1.msra.mxu0 %v2770_v55  ;;  %1148 = vmatprep.subr.mxu1 %v3174_v31 }
 0x7b3   :  { %1242 = vmatprep.subr.mxu0 %v2774_v56  ;;  %1282 = vmatprep.mubr.f32.mxu0 %v3168_v0 }
 0x7b4   :  { %1243 = vmatpush1.msra.mxu0 %v2778_v57  ;;  %1149 = vmatpush1.msra.mxu1 %v3175_v2 }
 0x7b5   :  { %1244 = vmatprep.subr.mxu0 %v2782_v58  ;;  %1434 = vmatprep.subr.mxu1 %v2785_v59 }
 0x7b6   :  { %1245 = vmatpush1.msra.mxu0 %v2788_v60 }
 0x7b7   :  { %1246 = vmatprep.subr.mxu0 %v2791_v61 }
 0x7b8   :  { %1247 = vmatpush1.msra.mxu0 %v2794_v62 }
 0x7b9   :  { %1248 = vmatprep.subr.mxu0 %v2797_v63 }
 0x7ba   :  { %1249 = vmatpush1.msra.mxu0 %v2800_v1 }
 0x7bb   :  { %1318 = vmatprep.subr.mxu0 %v3185_v9 }
 0x854   :  { %v1084_v22 = vpop.f32.mrf.mxu1 }
 0x855   :  { %v1089_v24 = vadd.f32 %v1084_v22, %v140_v20 }
 0x856   :  { %v1086_v39 = vpop.f32.mrf.mxu1 }
 0x857   :  { %v1932_v43 = vmul.f32 -1.442695, %v1089_v24  ;;  %v1090_v31 = vadd.f32 %v1086_v39, %v141_v30  ;;  %v2833_v39 = vld [vmem:[#allocation3 + $0x160] sm:$0xff]  ;;  %v2837_v30 = vld [vmem:[#allocation3 + $0x158] sm:$0xff] }
 0x859   :  { %2073 = vpow2.f32 %v1932_v43  ;;  %v1933_v38 = vmul.f32 -1.442695, %v1090_v31 }
 0x85a   :  { %2075 = vtanh.f32 %v1090_v31  ;;  %v2841_v31 = vld [vmem:[#allocation3 + $0x150] sm:$0xff] }
 0x866   :  { %v2074_v2 = vpop.eup %2073 }
 0x867   :  { %v1094_v16 = vadd.f32 1.0, %v2074_v2  ;;  %v2076_v6 = vpop.eup %2075  ;;  %v2845_v2 = vld [vmem:[#allocation3 + $0x148] sm:$0xff] }
 0x869   :  { %2077 = vrcp.f32 %v1094_v16  ;;  %v2849_v16 = vld [vmem:[#allocation3 + $0x140] sm:$0xff] }
 0x86b   :  { %v984_v9 = vpop.f32.mrf.mxu0 }
 0x86c   :  { %v989_v4 = vadd.f32 %v984_v9, %v2549_v37  ;;  %v2853_v9 = vld [vmem:[#allocation3 + $0x138] sm:$0xff] }
 0x86d   :  { %v986_v11 = vpop.f32.mrf.mxu0 }
 0x86e   :  { %v1929_v5 = vmul.f32 -1.442695, %v989_v4  ;;  %v990_v17 = vadd.f32 %v986_v11, %v2556_v27  ;;  %v2857_v4 = vld [vmem:[#allocation3 + $0x130] sm:$0xff]  ;;  %v2877_v11 = vld [vmem:[#allocation3 + $0x108] sm:$0xff] }
 0x870   :  { %2079 = vpow2.f32 %v1929_v5  ;;  %v1930_v45 = vmul.f32 -1.442695, %v990_v17  ;;  %v2861_v5 = vld [vmem:[#allocation3 + $0x128] sm:$0xff] }
 0x871   :  { %2081 = vtanh.f32 %v990_v17  ;;  %v2881_v17 = vld [vmem:[#allocation3 + $0x100] sm:$0xff] }
 0x876   :  { %v2078_v7 = vpop.eup %2077 }
 0x877   :  { %v1105_v8 = vmul.f32 %v2078_v7, %v2076_v6  ;;  %v1104_v35 = vmul.f32 %v2078_v7, %v2710_v25  ;;  %v2865_v6 = vld [vmem:[#allocation3 + $0x120] sm:$0xff]  ;;  %v2869_v7 = vld [vmem:[#allocation3 + $0x118] sm:$0xff] }
 0x879   :  { %1107 = vrot.lane.b32.xlu0 %v1105_v8, %s2256_s24  ;;  %v2873_v8 = vld [vmem:[#allocation3 + $0x110] sm:$0xff] }
 0x87d   :  { %v2080_v26 = vpop.eup %2079 }
 0x87e   :  { %v994_v13 = vadd.f32 1.0, %v2080_v26  ;;  %v2082_v32 = vpop.eup %2081  ;;  %v2885_v26 = vld [vmem:[#allocation3 + $0xf8] sm:$0xff] }
 0x880   :  { %2083 = vrcp.f32 %v994_v13  ;;  %v2889_v13 = vld [vmem:[#allocation3 + $0xf0] sm:$0xff] }
 0x881   :  { %2085 = vpow2.f32 %v1933_v38  ;;  %v2903_v38 = vld [vmem:[#allocation3 + $0xd8] sm:$0xff] }
 0x88d   :  { %v2084_v36 = vpop.eup %2083 }
 0x88e   :  { %v1005_v40 = vmul.f32 %v2084_v36, %v2082_v32  ;;  %v2086_v21 = vpop.eup %2085  ;;  %v1004_v25 = vmul.f32 %v2084_v36, %v2722_v3  ;;  %v2829_v3 = vld [vmem:[#allocation3 + $0x168] sm:$0xff]  ;;  %v2897_v36 = vld [vmem:[#allocation3 + $0xe0] sm:$0xff] }
 0x88f   :  { %v1101_v34 = vadd.f32 1.0, %v2086_v21  ;;  %v2893_v32 = vld [vmem:[#allocation3 + $0xe8] sm:$0xff]  ;;  %v2906_v21 = vld [vmem:[#allocation3 + $0xd0] sm:$0xff] }
 0x890   :  { %1007 = vrot.lane.b32.xlu0 %v1005_v40, %s2256_s24  ;;  %v2900_v40 = vld [vmem:[#allocation3 + $0x178] sm:$0xff] }
 0x891   :  { %2087 = vrcp.f32 %v1101_v34  ;;  %v2909_v34 = vld [vmem:[#allocation3 + $0xc8] sm:$0xff] }
 0x89e   :  { %v2088_v29 = vpop.eup %2087 }
 0x8eb   :  { %v1108_v42 = vpop.permute.xlu0 %1107 }
 0x8ec   :  { %v2813_v18 = vadd.f32 %v1108_v42, %v1104_v35  ;;  %v2912_v35 = vld [vmem:[#allocation3 + $0xc0] sm:$0xff]  ;;  %v2915_v42 = vld [vmem:[#allocation3 + $0xb8] sm:$0xff] }
 0x8ed   :  { %3188 = vst [vmem:[#allocation15_spill] sm:$0xff] %v2915_v42 }
 0x8ee   :  { %2089 = vtanh.f32 %v2813_v18 }
 0x8ef   :  { %2091 = vpow2.f32 %v1930_v45  ;;  %v2930_v45 = vld [vmem:[#allocation3 + $0x90] sm:$0xff] }
 0x8f0   :  { %3193 = vst [vmem:[#allocation22_spill] sm:$0xff] %v2930_v45 }
 0x8fb   :  { %v2090_v44 = vpop.eup %2089 }
 0x8fc   :  { %v1112_v15 = vmul.f32 %v2090_v44, %v2088_v29  ;;  %v2092_v47 = vpop.eup %2091  ;;  %v2918_v29 = vld [vmem:[#allocation3 + $0xb0] sm:$0xff]  ;;  %v2921_v44 = vld [vmem:[#allocation3 + $0xa8] sm:$0xff] }
 0x8fd   :  { %v1001_v10 = vadd.f32 1.0, %v2092_v47  ;;  %3189 = vst [vmem:[#allocation18_spill] sm:$0xff] %v2918_v29  ;;  %3190 = vst [vmem:[#allocation19_spill] sm:$0xff] %v2921_v44 }
 0x8fe   :  { %1114 = vrot.lane.b32.xlu1 %v1112_v15, %s2256_s24  ;;  %v2924_v15 = vld [vmem:[#allocation3 + $0xa0] sm:$0xff] }
 0x8ff   :  { %3191 = vst [vmem:[#allocation20_spill] sm:$0xff] %v2924_v15 }
 0x902   :  { %81 = vperm.xlu1 %1988, %v51_v14   ;;  %v1008_v46 = vpop.permute.xlu0 %1007  ;;  %v2927_v14 = vld [vmem:[#allocation3 + $0x98] sm:$0xff] }
 0x903   :  { %v2821_v48 = vadd.f32 %v1008_v46, %v1004_v25  ;;  %3192 = vst [vmem:[#allocation21_spill] sm:$0xff] %v2927_v14  ;;  %v2933_v46 = vld [vmem:[#allocation3 + $0x88] sm:$0xff]  ;;  %v2936_v25 = vld [vmem:[#allocation3 + $0x80] sm:$0xff] }
 0x904   :  { %3194 = vst [vmem:[#allocation23_spill] sm:$0xff] %v2933_v46  ;;  %3195 = vst [vmem:[#allocation14_spill] sm:$0xff] %v2936_v25 }
 0x905   :  { %2093 = vtanh.f32 %v2821_v48 }
 0x906   :  { %2095 = vrcp.f32 %v1001_v10 }
 0x912   :  { %v2094_v19 = vpop.eup %2093 }
 0x913   :  { %v2096_v20 = vpop.eup %2095 }
 0x914   :  { %v1012_v22 = vmul.f32 %v2096_v20, %v2094_v19 }
 0x970   :  { %v1115_v24 = vpop.permute.xlu1 %1114 }
 0x971   :  { %v1117_v43 = vsel %vm182_vm0, %v1115_v24, %v1012_v22  ;;  %1936 = vmatmul.mubr.msk.f32.vlgmr.msra.gmra.mxu0 %vm182_vm0, %v1115_v24 }
 0x972   :  { %1183 = vmatmul.mubr.f32.vlgmr.msra.gmra.mxu1 %v1117_v43  ;;  %1319 = vmatpush1.msra.mxu0 %v2826_v23 }
 0x973   :  { %1320 = vmatprep.subr.mxu0 %v2829_v3  ;;  %1435 = vmatpush1.msra.mxu1 %v2746_v49 }
 0x974   :  { %1321 = vmatpush1.msra.mxu0 %v2833_v39  ;;  %1436 = vmatprep.subr.mxu1 %v2750_v50 }
 0x975   :  { %1322 = vmatprep.subr.mxu0 %v2837_v30  ;;  %1437 = vmatpush1.msra.mxu1 %v2754_v51 }
 0x976   :  { %1323 = vmatpush1.msra.mxu0 %v2841_v31  ;;  %1438 = vmatprep.subr.mxu1 %v2758_v52 }
 0x977   :  { %1324 = vmatprep.subr.mxu0 %v2845_v2  ;;  %1439 = vmatpush1.msra.mxu1 %v2762_v53 }
 0x978   :  { %1325 = vmatpush1.msra.mxu0 %v2849_v16  ;;  %1440 = vmatprep.subr.mxu1 %v2766_v54 }
 0x979   :  { %1326 = vmatprep.subr.mxu0 %v2853_v9  ;;  %1441 = vmatpush1.msra.mxu1 %v2770_v55 }
 0x97a   :  { %1327 = vmatpush1.msra.mxu0 %v2857_v4  ;;  %1442 = vmatprep.subr.mxu1 %v2774_v56 }
 0x97b   :  { %1328 = vmatprep.subr.mxu0 %v2861_v5  ;;  %1443 = vmatpush1.msra.mxu1 %v2778_v57 }
 0x97c   :  { %1329 = vmatpush1.msra.mxu0 %v2865_v6  ;;  %1444 = vmatprep.subr.mxu1 %v2782_v58 }
 0x97d   :  { %1330 = vmatprep.subr.mxu0 %v2869_v7  ;;  %1445 = vmatpush1.msra.mxu1 %v2788_v60  ;;  %v82_v47 = vpop.permute.xlu1 %81 }
 0x97e   :  { %1331 = vmatpush1.msra.mxu0 %v2873_v8  ;;  %1446 = vmatprep.subr.mxu1 %v2791_v61  ;;  %v115_v10 = vmul.f32 %v3186_v12, %v82_v47 }
 0x97f   :  { %1332 = vmatprep.subr.mxu0 %v2877_v11  ;;  %1447 = vmatpush1.msra.mxu1 %v2794_v62 }
 0x980   :  { %1333 = vmatpush1.msra.mxu0 %v2881_v17  ;;  %1448 = vmatprep.subr.mxu1 %v2797_v63  ;;  %v142_v19 = vadd.f32 %v3178_v41, %v115_v10 }
 0x981   :  { %1334 = vmatprep.subr.mxu0 %v2885_v26  ;;  %1449 = vmatpush1.msra.mxu1 %v2800_v1 }
 0x982   :  { %1335 = vmatpush1.msra.mxu0 %v2889_v13  ;;  %1482 = vmatprep.mubr.f32.mxu1 %v3168_v0 }
 0x983   :  { %1336 = vmatprep.subr.mxu0 %v2893_v32  ;;  %1382 = vmatprep.mubr.f32.mxu0 %v3168_v0 }
 0x984   :  { %1337 = vmatpush1.msra.mxu0 %v2897_v36  ;;  %1518 = vmatprep.subr.mxu1 %v2900_v40 }
 0x985   :  { %1338 = vmatprep.subr.mxu0 %v2903_v38 }
 0x986   :  { %1339 = vmatpush1.msra.mxu0 %v2906_v21 }
 0x987   :  { %1340 = vmatprep.subr.mxu0 %v2909_v34 }
 0x988   :  { %1341 = vmatpush1.msra.mxu0 %v2912_v35 }
 0x989   :  { %1342 = vmatprep.subr.mxu0 %v2915_v42 }
 0x98a   :  { %1343 = vmatpush1.msra.mxu0 %v2918_v29 }
 0x98b   :  { %1344 = vmatprep.subr.mxu0 %v2921_v44 }
 0x98c   :  { %1345 = vmatpush1.msra.mxu0 %v2924_v15 }
 0x98d   :  { %1346 = vmatprep.subr.mxu0 %v2927_v14 }
 0x98e   :  { %1347 = vmatpush1.msra.mxu0 %v2930_v45 }
 0x98f   :  { %1348 = vmatprep.subr.mxu0 %v2933_v46  ;;  %v116_v46 = vmul.f32 %v2371_v33, %v82_v47 }
 0x990   :  { %1349 = vmatpush1.msra.mxu0 %v2936_v25 }
 0x991   :  { %1634 = vmatprep.subr.mxu0 %v2785_v59  ;;  %v143_v25 = vadd.f32 %v3187_v28, %v116_v46 }
 0xa31   :  { %v1284_v20 = vpop.f32.mrf.mxu0 }
 0xa32   :  { %v1289_v22 = vadd.f32 %v1284_v20, %v142_v19  ;;  %v1184_v24 = vpop.f32.mrf.mxu1 }
 0xa33   :  { %v1189_v43 = vadd.f32 %v1184_v24, %v2549_v37  ;;  %v1286_v15 = vpop.f32.mrf.mxu0 }
 0xa34   :  { %v1937_v45 = vmul.f32 -1.442695, %v1289_v22  ;;  %v1290_v59 = vadd.f32 %v1286_v15, %v143_v25  ;;  %v1186_v29 = vpop.f32.mrf.mxu1 }
 0xa35   :  { %v1934_v14 = vmul.f32 -1.442695, %v1189_v43  ;;  %v1190_v19 = vadd.f32 %v1186_v29, %v2556_v27 }
 0xa36   :  { %2097 = vpow2.f32 %v1937_v45  ;;  %v1938_v15 = vmul.f32 -1.442695, %v1290_v59 }
 0xa37   :  { %2099 = vpow2.f32 %v1934_v14 }
 0xa38   :  { %2101 = vtanh.f32 %v1290_v59  ;;  %v52_v59 = vld [vmem:[%s3098_s0 + $0x30] sm:$0xff] }
 0xa43   :  { %v2098_v44 = vpop.eup %2097 }
 0xa44   :  { %v2100_v12 = vpop.eup %2099  ;;  %v1294_v42 = vadd.f32 1.0, %v2098_v44 }
 0xa45   :  { %v1194_v10 = vadd.f32 1.0, %v2100_v12  ;;  %v2102_v20 = vpop.eup %2101 }
 0xa46   :  { %2103 = vrcp.f32 %v1294_v42 }
 0xa47   :  { %2105 = vrcp.f32 %v1194_v10 }
 0xa48   :  { %2107 = vtanh.f32 %v1190_v19 }
 0xa49   :  { %2109 = vpow2.f32 %v1938_v15 }
 0xa53   :  { %v2104_v45 = vpop.eup %2103 }
 0xa54   :  { %v1305_v14 = vmul.f32 %v2104_v45, %v2102_v20  ;;  %v2106_v22 = vpop.eup %2105  ;;  %v1304_v42 = vmul.f32 %v2104_v45, %v2813_v18  ;;  %v1935_v20 = vmul.f32 -1.442695, %v1190_v19 }
 0xa55   :  { %v2108_v47 = vpop.eup %2107  ;;  %v1204_v18 = vmul.f32 %v2106_v22, %v2821_v48 }
 0xa56   :  { %1307 = vrot.lane.b32.xlu0 %v1305_v14, %s2256_s24  ;;  %v1205_v46 = vmul.f32 %v2108_v47, %v2106_v22  ;;  %v2110_v44 = vpop.eup %2109 }
 0xa57   :  { %v1301_v12 = vadd.f32 1.0, %v2110_v44 }
 0xa59   :  { %2111 = vrcp.f32 %v1301_v12 }
 0xa5a   :  { %1207 = vrot.lane.b32.xlu0 %v1205_v46, %s2256_s24 }
 0xa66   :  { %v2112_v24 = vpop.eup %2111 }
 0xac8   :  { %v1308_v25 = vpop.permute.xlu0 %1307 }
 0xac9   :  { %v2949_v29 = vadd.f32 %v1308_v25, %v1304_v42 }
 0xacb   :  { %2113 = vtanh.f32 %v2949_v29 }
 0xacc   :  { %2115 = vpow2.f32 %v1935_v20  ;;  %v1208_v14 = vpop.permute.xlu0 %1207 }
 0xacd   :  { %v2957_v47 = vadd.f32 %v1208_v14, %v1204_v18 }
 0xacf   :  { %2117 = vtanh.f32 %v2957_v47 }
 0xad8   :  { %v2114_v43 = vpop.eup %2113 }
 0xad9   :  { %v1312_v10 = vmul.f32 %v2114_v43, %v2112_v24  ;;  %v2116_v45 = vpop.eup %2115 }
 0xada   :  { %v1201_v46 = vadd.f32 1.0, %v2116_v45 }
 0xadb   :  { %1314 = vrot.lane.b32.xlu1 %v1312_v10, %s2256_s24 }
 0xadc   :  { %2119 = vrcp.f32 %v1201_v46  ;;  %v2118_v15 = vpop.eup %2117 }
 0xadf   :  { %86 = vperm.xlu1 %1988, %v52_v59  }
 0xae9   :  { %v2120_v44 = vpop.eup %2119 }
 0xaea   :  { %v1212_v12 = vmul.f32 %v2120_v44, %v2118_v15 }
 0xb4d   :  { %v1315_v42 = vpop.permute.xlu1 %1314 }
 0xb4e   :  { %v1317_v25 = vsel %vm182_vm0, %v1315_v42, %v1212_v12  ;;  %1941 = vmatmul.mubr.msk.f32.vlgmr.msra.gmra.mxu1 %vm182_vm0, %v1315_v42 }
 0xb4f   :  { %1383 = vmatmul.mubr.f32.vlgmr.msra.gmra.mxu0 %v1317_v25  ;;  %1519 = vmatpush1.msra.mxu1 %v2826_v23 }
 0xb50   :  { %1520 = vmatprep.subr.mxu1 %v2829_v3  ;;  %1635 = vmatpush1.msra.mxu0 %v2746_v49  ;;  %v3196_v49 = vld [vmem:[#allocation15_spill] sm:$0xff] }
 0xb51   :  { %1521 = vmatpush1.msra.mxu1 %v2833_v39  ;;  %1636 = vmatprep.subr.mxu0 %v2750_v50  ;;  %v3197_v50 = vld [vmem:[#allocation18_spill] sm:$0xff] }
 0xb52   :  { %1522 = vmatprep.subr.mxu1 %v2837_v30  ;;  %1637 = vmatpush1.msra.mxu0 %v2754_v51  ;;  %v3198_v51 = vld [vmem:[#allocation19_spill] sm:$0xff] }
 0xb53   :  { %1523 = vmatpush1.msra.mxu1 %v2841_v31  ;;  %1638 = vmatprep.subr.mxu0 %v2758_v52  ;;  %v3199_v52 = vld [vmem:[#allocation20_spill] sm:$0xff] }
 0xb54   :  { %1524 = vmatprep.subr.mxu1 %v2845_v2  ;;  %1639 = vmatpush1.msra.mxu0 %v2762_v53  ;;  %v3200_v53 = vld [vmem:[#allocation21_spill] sm:$0xff] }
 0xb55   :  { %1525 = vmatpush1.msra.mxu1 %v2849_v16  ;;  %1640 = vmatprep.subr.mxu0 %v2766_v54  ;;  %v3201_v54 = vld [vmem:[#allocation22_spill] sm:$0xff] }
 0xb56   :  { %1526 = vmatprep.subr.mxu1 %v2853_v9  ;;  %1641 = vmatpush1.msra.mxu0 %v2770_v55  ;;  %v3202_v55 = vld [vmem:[#allocation23_spill] sm:$0xff] }
 0xb57   :  { %1527 = vmatpush1.msra.mxu1 %v2857_v4  ;;  %1642 = vmatprep.subr.mxu0 %v2774_v56  ;;  %v3203_v56 = vld [vmem:[#allocation14_spill] sm:$0xff] }
 0xb58   :  { %1528 = vmatprep.subr.mxu1 %v2861_v5  ;;  %1643 = vmatpush1.msra.mxu0 %v2778_v57 }
 0xb59   :  { %1529 = vmatpush1.msra.mxu1 %v2865_v6  ;;  %1644 = vmatprep.subr.mxu0 %v2782_v58  ;;  %v3204_v58 = vld [vmem:[#allocation13_spill] sm:$0xff] }
 0xb5a   :  { %1530 = vmatprep.subr.mxu1 %v2869_v7  ;;  %1645 = vmatpush1.msra.mxu0 %v2788_v60  ;;  %v87_v57 = vpop.permute.xlu1 %86 }
 0xb5b   :  { %1531 = vmatpush1.msra.mxu1 %v2873_v8  ;;  %1646 = vmatprep.subr.mxu0 %v2791_v61  ;;  %v117_v60 = vmul.f32 %v3204_v58, %v87_v57  ;;  %v118_v22 = vmul.f32 %v2371_v33, %v87_v57 }
 0xb5c   :  { %1532 = vmatprep.subr.mxu1 %v2877_v11  ;;  %1647 = vmatpush1.msra.mxu0 %v2794_v62 }
 0xb5d   :  { %1533 = vmatpush1.msra.mxu1 %v2881_v17  ;;  %1648 = vmatprep.subr.mxu0 %v2797_v63  ;;  %v144_v61 = vadd.f32 %v3178_v41, %v117_v60  ;;  %v145_v43 = vadd.f32 %v3187_v28, %v118_v22 }
 0xb5e   :  { %1534 = vmatprep.subr.mxu1 %v2885_v26  ;;  %1649 = vmatpush1.msra.mxu0 %v2800_v1 }
 0xb5f   :  { %1535 = vmatpush1.msra.mxu1 %v2889_v13  ;;  %1682 = vmatprep.mubr.f32.mxu0 %v3168_v0 }
 0xb60   :  { %1536 = vmatprep.subr.mxu1 %v2893_v32  ;;  %1582 = vmatprep.mubr.f32.mxu1 %v3168_v0 }
 0xb61   :  { %1537 = vmatpush1.msra.mxu1 %v2897_v36  ;;  %1718 = vmatprep.subr.mxu0 %v2900_v40 }
 0xb62   :  { %1538 = vmatprep.subr.mxu1 %v2903_v38 }
 0xb63   :  { %1539 = vmatpush1.msra.mxu1 %v2906_v21 }
 0xb64   :  { %1540 = vmatprep.subr.mxu1 %v2909_v34 }
 0xb65   :  { %1541 = vmatpush1.msra.mxu1 %v2912_v35 }
 0xb66   :  { %1542 = vmatprep.subr.mxu1 %v3196_v49 }
 0xb67   :  { %1543 = vmatpush1.msra.mxu1 %v3197_v50 }
 0xb68   :  { %1544 = vmatprep.subr.mxu1 %v3198_v51 }
 0xb69   :  { %1545 = vmatpush1.msra.mxu1 %v3199_v52 }
 0xb6a   :  { %1546 = vmatprep.subr.mxu1 %v3200_v53 }
 0xb6b   :  { %1547 = vmatpush1.msra.mxu1 %v3201_v54 }
 0xb6c   :  { %1548 = vmatprep.subr.mxu1 %v3202_v55 }
 0xb6d   :  { %1549 = vmatpush1.msra.mxu1 %v3203_v56 }
 0xb6e   :  { %1961 = vmatprep.subr.mxu1 %v3168_v0 }
 0xc0e   :  { %v1484_v62 = vpop.f32.mrf.mxu1 }
 0xc0f   :  { %v1489_v63 = vadd.f32 %v1484_v62, %v144_v61  ;;  %v1384_v1 = vpop.f32.mrf.mxu0 }
 0xc10   :  { %v1389_v48 = vadd.f32 %v1384_v1, %v2549_v37  ;;  %v1486_v24 = vpop.f32.mrf.mxu1 }
 0xc11   :  { %v1942_v40 = vmul.f32 -1.442695, %v1489_v63  ;;  %v1490_v10 = vadd.f32 %v1486_v24, %v145_v43  ;;  %v1386_v20 = vpop.f32.mrf.mxu0  ;;  %v53_v24 = vld [vmem:[%s3098_s0 + $0x38] sm:$0xff] }
 0xc12   :  { %v1939_v19 = vmul.f32 -1.442695, %v1389_v48  ;;  %v1390_v46 = vadd.f32 %v1386_v20, %v2556_v27 }
 0xc13   :  { %2121 = vpow2.f32 %v1942_v40  ;;  %v1943_v60 = vmul.f32 -1.442695, %v1490_v10 }
 0xc14   :  { %2123 = vpow2.f32 %v1939_v19  ;;  %v1940_v43 = vmul.f32 -1.442695, %v1390_v46 }
 0xc15   :  { %2125 = vtanh.f32 %v1490_v10 }
 0xc20   :  { %v2122_v59 = vpop.eup %2121 }
 0xc21   :  { %v2124_v14 = vpop.eup %2123  ;;  %v1494_v18 = vadd.f32 1.0, %v2122_v59 }
 0xc22   :  { %v1394_v45 = vadd.f32 1.0, %v2124_v14  ;;  %v2126_v15 = vpop.eup %2125 }
 0xc23   :  { %2127 = vrcp.f32 %v1494_v18 }
 0xc24   :  { %2129 = vrcp.f32 %v1394_v45 }
 0xc25   :  { %2131 = vtanh.f32 %v1390_v46 }
 0xc26   :  { %2133 = vpow2.f32 %v1943_v60 }
 0xc30   :  { %v2128_v44 = vpop.eup %2127 }
 0xc31   :  { %v1505_v12 = vmul.f32 %v2128_v44, %v2126_v15  ;;  %v2130_v42 = vpop.eup %2129  ;;  %v1504_v63 = vmul.f32 %v2128_v44, %v2949_v29 }
 0xc32   :  { %v2132_v25 = vpop.eup %2131  ;;  %v1404_v29 = vmul.f32 %v2130_v42, %v2957_v47 }
 0xc33   :  { %1507 = vrot.lane.b32.xlu0 %v1505_v12, %s2256_s24  ;;  %v1405_v57 = vmul.f32 %v2132_v25, %v2130_v42  ;;  %v2134_v61 = vpop.eup %2133 }
 0xc34   :  { %v1501_v62 = vadd.f32 1.0, %v2134_v61 }
 0xc36   :  { %2135 = vrcp.f32 %v1501_v62 }
 0xc37   :  { %1407 = vrot.lane.b32.xlu0 %v1405_v57, %s2256_s24 }
 0xc43   :  { %v2136_v40 = vpop.eup %2135 }
 0xca5   :  { %v1508_v1 = vpop.permute.xlu0 %1507 }
 0xca6   :  { %v3021_v48 = vadd.f32 %v1508_v1, %v1504_v63 }
 0xca8   :  { %2137 = vtanh.f32 %v3021_v48 }
 0xca9   :  { %2139 = vpow2.f32 %v1940_v43  ;;  %v1408_v10 = vpop.permute.xlu0 %1407 }
 0xcaa   :  { %v3029_v20 = vadd.f32 %v1408_v10, %v1404_v29 }
 0xcac   :  { %2141 = vtanh.f32 %v3029_v20 }
 0xcb5   :  { %v2138_v19 = vpop.eup %2137 }
 0xcb6   :  { %v1512_v22 = vmul.f32 %v2138_v19, %v2136_v40  ;;  %v2140_v59 = vpop.eup %2139 }
 0xcb7   :  { %v1401_v14 = vadd.f32 1.0, %v2140_v59 }
 0xcb8   :  { %1514 = vrot.lane.b32.xlu1 %v1512_v22, %s2256_s24 }
 0xcb9   :  { %2143 = vrcp.f32 %v1401_v14  ;;  %v2142_v18 = vpop.eup %2141  ;;  %v1820_v14 = vld [vmem:[#allocation3 + $0x1f0] sm:$0xff] }
 0xcbc   :  { %91 = vperm.xlu1 %1988, %v53_v24  }
 0xcc6   :  { %v2144_v45 = vpop.eup %2143 }
 0xcc7   :  { %v1412_v15 = vmul.f32 %v2144_v45, %v2142_v18  ;;  %v1819_v18 = vld [vmem:[#allocation3 + $0x1e0] sm:$0xff]  ;;  %v1816_v45 = vld [vmem:[#allocation3 + $0x1b0] sm:$0xff] }
 0xd2a   :  { %v1515_v44 = vpop.permute.xlu1 %1514 }
 0xd2b   :  { %v1517_v12 = vsel %vm182_vm0, %v1515_v44, %v1412_v15  ;;  %1946 = vmatmul.mubr.msk.f32.vlgmr.msra.gmra.mxu0 %vm182_vm0, %v1515_v44  ;;  %v1815_v15 = vld [vmem:[#allocation3 + $0x1a0] sm:$0xff]  ;;  %v1814_v44 = vld [vmem:[#allocation3 + $0x190] sm:$0xff] }
 0xd2c   :  { %1583 = vmatmul.mubr.f32.vlgmr.msra.gmra.mxu1 %v1517_v12  ;;  %1719 = vmatpush1.msra.mxu0 %v2826_v23  ;;  %v1813_v12 = vld [vmem:[#allocation3 + $0x180] sm:$0xff] }
 0xd2d   :  { %1720 = vmatprep.subr.mxu0 %v2829_v3  ;;  %1782 = vmatprep.mubr.f32.mxu0 %v3168_v0 }
 0xd2e   :  { %1721 = vmatpush1.msra.mxu0 %v2833_v39  ;;  %1962 = vmatpush3.msra.mxu1 %v1820_v14 }
 0xd2f   :  { %1722 = vmatprep.subr.mxu0 %v2837_v30  ;;  %1977 = vmatprep.mubr.msk.f32.mxu1 %vm2257_vm1, %v3168_v0 }
 0xd30   :  { %1723 = vmatpush1.msra.mxu0 %v2841_v31  ;;  %1963 = vmatprep.subr.mxu1 %v3168_v0 }
 0xd31   :  { %1724 = vmatprep.subr.mxu0 %v2845_v2  ;;  %1964 = vmatpush3.msra.mxu1 %v1819_v18 }
 0xd32   :  { %1725 = vmatpush1.msra.mxu0 %v2849_v16  ;;  %1965 = vmatprep.subr.mxu1 %v3168_v0 }
 0xd33   :  { %1726 = vmatprep.subr.mxu0 %v2853_v9 }
 0xd34   :  { %1727 = vmatpush1.msra.mxu0 %v2857_v4 }
 0xd35   :  { %1728 = vmatprep.subr.mxu0 %v2861_v5 }
 0xd36   :  { %1729 = vmatpush1.msra.mxu0 %v2865_v6 }
 0xd37   :  { %1730 = vmatprep.subr.mxu0 %v2869_v7  ;;  %v92_v23 = vpop.permute.xlu1 %91 }
 0xd38   :  { %1731 = vmatpush1.msra.mxu0 %v2873_v8  ;;  %v119_v3 = vmul.f32 %v3204_v58, %v92_v23  ;;  %v120_v5 = vmul.f32 %v2371_v33, %v92_v23 }
 0xd39   :  { %1732 = vmatprep.subr.mxu0 %v2877_v11 }
 0xd3a   :  { %1733 = vmatpush1.msra.mxu0 %v2881_v17  ;;  %v146_v39 = vadd.f32 %v3178_v41, %v119_v3  ;;  %v147_v7 = vadd.f32 %v3187_v28, %v120_v5 }
 0xd3b   :  { %1734 = vmatprep.subr.mxu0 %v2885_v26 }
 0xd3c   :  { %1735 = vmatpush1.msra.mxu0 %v2889_v13 }
 0xd3d   :  { %1736 = vmatprep.subr.mxu0 %v2893_v32 }
 0xd3e   :  { %1737 = vmatpush1.msra.mxu0 %v2897_v36 }
 0xd3f   :  { %1738 = vmatprep.subr.mxu0 %v2903_v38 }
 0xd40   :  { %1739 = vmatpush1.msra.mxu0 %v2906_v21 }
 0xd41   :  { %1740 = vmatprep.subr.mxu0 %v2909_v34 }
 0xd42   :  { %1741 = vmatpush1.msra.mxu0 %v2912_v35 }
 0xd43   :  { %1742 = vmatprep.subr.mxu0 %v3196_v49 }
 0xd44   :  { %1743 = vmatpush1.msra.mxu0 %v3197_v50 }
 0xd45   :  { %1744 = vmatprep.subr.mxu0 %v3198_v51 }
 0xd46   :  { %1745 = vmatpush1.msra.mxu0 %v3199_v52 }
 0xd47   :  { %1746 = vmatprep.subr.mxu0 %v3200_v53 }
 0xd48   :  { %1747 = vmatpush1.msra.mxu0 %v3201_v54 }
 0xd49   :  { %1748 = vmatprep.subr.mxu0 %v3202_v55 }
 0xd4a   :  { %1749 = vmatpush1.msra.mxu0 %v3203_v56 }
 0xdeb   :  { %v1684_v30 = vpop.f32.mrf.mxu0 }
 0xdec   :  { %v1689_v31 = vadd.f32 %v1684_v30, %v146_v39  ;;  %v1584_v2 = vpop.f32.mrf.mxu1 }
 0xded   :  { %v1589_v16 = vadd.f32 %v1584_v2, %v2549_v37  ;;  %v1686_v6 = vpop.f32.mrf.mxu0 }
 0xdee   :  { %v1947_v9 = vmul.f32 -1.442695, %v1689_v31  ;;  %v1586_v8 = vpop.f32.mrf.mxu1  ;;  %v1690_v11 = vadd.f32 %v1686_v6, %v147_v7  ;;  %v3205_v6 = vld [vmem:[#allocation12_spill] sm:$0xff] }
 0xdef   :  { %v1944_v4 = vmul.f32 -1.442695, %v1589_v16  ;;  %v1590_v17 = vadd.f32 %v1586_v8, %v2556_v27 }
 0xdf0   :  { %2145 = vpow2.f32 %v1947_v9  ;;  %v1948_v28 = vmul.f32 -1.442695, %v1690_v11 }
 0xdf1   :  { %2147 = vpow2.f32 %v1944_v4  ;;  %v1945_v56 = vmul.f32 -1.442695, %v1590_v17 }
 0xdf2   :  { %2149 = vtanh.f32 %v1690_v11 }
 0xdf3   :  { %2151 = vtanh.f32 %v1590_v17 }
 0xdfd   :  { %v2146_v26 = vpop.eup %2145 }
 0xdfe   :  { %v2148_v41 = vpop.eup %2147  ;;  %v1694_v13 = vadd.f32 1.0, %v2146_v26 }
 0xdff   :  { %v1594_v32 = vadd.f32 1.0, %v2148_v41  ;;  %v2150_v36 = vpop.eup %2149 }
 0xe00   :  { %2153 = vrcp.f32 %v1694_v13  ;;  %v2152_v38 = vpop.eup %2151 }
 0xe01   :  { %2155 = vrcp.f32 %v1594_v32 }
 0xe02   :  { %2157 = vpow2.f32 %v1948_v28 }
 0xe0d   :  { %v2154_v21 = vpop.eup %2153 }
 0xe0e   :  { %v2156_v34 = vpop.eup %2155  ;;  %v1705_v33 = vmul.f32 %v2154_v21, %v2150_v36  ;;  %v1704_v50 = vmul.f32 %v2154_v21, %v3021_v48 }
 0xe0f   :  { %v1605_v35 = vmul.f32 %v2156_v34, %v2152_v38  ;;  %v2158_v47 = vpop.eup %2157  ;;  %v1604_v46 = vmul.f32 %v2156_v34, %v3029_v20 }
 0xe10   :  { %1707 = vrot.lane.b32.xlu0 %v1705_v33, %s2256_s24  ;;  %v1701_v49 = vadd.f32 1.0, %v2158_v47 }
 0xe11   :  { %1607 = vrot.lane.b32.xlu1 %v1605_v35, %s2256_s24 }
 0xe12   :  { %2159 = vrcp.f32 %v1701_v49 }
 0xe1f   :  { %v2160_v53 = vpop.eup %2159 }
 0xe82   :  { %v1708_v51 = vpop.permute.xlu0 %1707 }
 0xe83   :  { %v1710_v52 = vadd.f32 %v1708_v51, %v1704_v50  ;;  %v1608_v58 = vpop.permute.xlu1 %1607 }
 0xe84   :  { %v1610_v25 = vadd.f32 %v1608_v58, %v1604_v46 }
 0xe85   :  { %2161 = vtanh.f32 %v1710_v52 }
 0xe86   :  { %2163 = vpow2.f32 %v1945_v56 }
 0xe87   :  { %2165 = vtanh.f32 %v1610_v25 }
 0xe92   :  { %v2162_v54 = vpop.eup %2161 }
 0xe93   :  { %v1712_v55 = vmul.f32 %v2162_v54, %v2160_v53  ;;  %v2164_v42 = vpop.eup %2163 }
 0xe94   :  { %v1601_v57 = vadd.f32 1.0, %v2164_v42  ;;  %v2166_v60 = vpop.eup %2165 }
 0xe95   :  { %1714 = vrot.lane.b32.xlu0 %v1712_v55, %s2256_s24 }
 0xe96   :  { %2167 = vrcp.f32 %v1601_v57 }
 0xea3   :  { %v2168_v61 = vpop.eup %2167 }
 0xea4   :  { %v1612_v62 = vmul.f32 %v2168_v61, %v2166_v60 }
 0xf07   :  { %v1715_v63 = vpop.permute.xlu0 %1714 }
 0xf08   :  { %v1717_v1 = vsel %vm182_vm0, %v1715_v63, %v1612_v62 }
 0xf09   :  { %1783 = vmatmul.mubr.f32.vlgmr.msra.gmra.mxu0 %v1717_v1 }
 0xfc9   :  { %v1784_v48 = vpop.f32.mrf.mxu0 }
 0xfca   :  { %v1789_v40 = vadd.f32 %v1784_v48, %v2549_v37  ;;  %v1818_v37 = vld [vmem:[#allocation3 + $0x1d0] sm:$0xff] }
 0xfcb   :  { %v1786_v22 = vpop.f32.mrf.mxu0  ;;  %1966 = vmatpush3.msra.mxu1 %v1818_v37 }
 0xfcc   :  { %v1949_v19 = vmul.f32 -1.442695, %v1789_v40  ;;  %v1790_v24 = vadd.f32 %v1786_v22, %v2556_v27  ;;  %v1817_v27 = vld [vmem:[#allocation3 + $0x1c0] sm:$0xff]  ;;  %1967 = vmatprep.subr.mxu1 %v3168_v0 }
 0xfcd   :  { %1968 = vmatpush3.msra.mxu1 %v1817_v27 }
 0xfce   :  { %2169 = vpow2.f32 %v1949_v19  ;;  %1969 = vmatprep.subr.mxu1 %v3168_v0  ;;  %v1950_v23 = vmul.f32 -1.442695, %v1790_v24 }
 0xfcf   :  { %2171 = vtanh.f32 %v1790_v24  ;;  %1970 = vmatpush3.msra.mxu1 %v1816_v45 }
 0xfd0   :  { %1971 = vmatprep.subr.mxu1 %v3168_v0 }
 0xfd1   :  { %1972 = vmatpush3.msra.mxu1 %v1815_v15 }
 0xfd2   :  { %1973 = vmatprep.subr.mxu1 %v3168_v0 }
 0xfd3   :  { %1974 = vmatpush3.msra.mxu1 %v1814_v44 }
 0xfd4   :  { %1975 = vmatprep.subr.mxu1 %v3168_v0  ;;  %v1910_v0 = vld [vmem:[%s3100_s2 + $0x6] sm:$0x3] }
 0xfd5   :  { %1976 = vmatpush3.msra.mxu1 %v1813_v12  ;;  %v1825_v7 = vrot.slane %v1910_v0, %v3205_v6 }
 0xfdb   :  { %v2170_v43 = vpop.eup %2169 }
 0xfdc   :  { %v1794_v10 = vadd.f32 1.0, %v2170_v43  ;;  %v2172_v29 = vpop.eup %2171 }
 0xfde   :  { %2173 = vrcp.f32 %v1794_v10 }
 0xfdf   :  { %2175 = vpow2.f32 %v1950_v23 }
 0xfeb   :  { %v2174_v59 = vpop.eup %2173 }
 0xfec   :  { %v1805_v20 = vmul.f32 %v2174_v59, %v2172_v29  ;;  %v2176_v3 = vpop.eup %2175  ;;  %v1804_v30 = vmul.f32 %v2174_v59, %v1610_v25 }
 0xfed   :  { %v1801_v39 = vadd.f32 1.0, %v2176_v3 }
 0xfee   :  { %1807 = vrot.lane.b32.xlu1 %v1805_v20, %s2256_s24 }
 0xfef   :  { %2177 = vrcp.f32 %v1801_v39 }
 0xffc   :  { %v2178_v16 = vpop.eup %2177 }
0x1060   :  { %v1808_v31 = vpop.permute.xlu1 %1807 }
0x1061   :  { %v1810_v2 = vadd.f32 %v1808_v31, %v1804_v30 }
0x1063   :  { %2179 = vtanh.f32 %v1810_v2 }
0x1070   :  { %v2180_v9 = vpop.eup %2179 }
0x1071   :  { %v1812_v4 = vmul.f32 %v2180_v9, %v2178_v16 }
0x1073   :  { %1828 = vrot.lane.b32.xlu0 %v1812_v4, %s2256_s24 }
0x10e5   :  { %v1829_v5 = vpop.permute.xlu0 %1828 }
0x10e6   :  { %1978 = vmatmul.mubr.msk.f32.vlgmr.msra.gmra.mxu1 %vm182_vm0, %v1829_v5 }
0x11a6   :  { %v1898_v8 = vpop.f32.mrf.mxu1 }
0x11a7   :  { %v1899_v11 = vadd.f32 %v1898_v8, %v1825_v7 }
0x11a8   :  { %v1979_v17 = vpop.f32.mrf.mxu1 }
0x11a9   :  { %1902 = vst [vmem:[%s3101_s3] sm:$0xff] %v1899_v11 }
0x11aa   :  { %1907 = vsyncpa [#allocation4], 1 }

</bundles_post_ra>
